<compile_context>
chip_gen: v7x
topology: tpu7x:2x2x1
jax: 0.10.0
libtpu: 0.0.40
codegen_flags: <defaults>
</compile_context>

<pallas_src>
import jax
import jax.numpy as jnp
from jax import lax
from jax.experimental import pallas as pl
from jax.experimental.pallas import tpu as pltpu

# ---- default norse LSNNParameters ------------------------------------------
DT = 1e-3
TAU_SYN_INV = 1.0 / 5e-3       # 200.0
TAU_MEM_INV = 1.0 / 1e-2       # 100.0
TAU_ADAPT_INV = 1.0 / 700.0
V_LEAK = 0.0
V_TH = 1.0
V_RESET = 0.0
BETA = 1.8
# threshold method "super": forward pass == heaviside(x) = (x > 0)


def _cdiv(a, b):
    return -(-a // b)


def _round_up(x, m):
    return _cdiv(x, m) * m


def _tensorcores_per_chip():
    """Best-effort TC-per-chip detection (v7x / v4 / v5p have 2)."""
    try:
        kind = jax.devices()[0].device_kind.lower()
    except Exception:
        return 1
    if "v7" in kind or "v4" in kind or "v5p" in kind:
        return 2
    return 1


def _vmem_limit_bytes(block_bytes):
    """Generation-aware scoped-VMEM budget: capacity minus headroom."""
    try:
        cap = int(pltpu.get_tpu_info().vmem_capacity_bytes)
    except Exception:
        cap = 64 << 20                       # conservative (v7x per-TC VMEM)
    cap = max(32 << 20, cap - (16 << 20))    # leave compiler scratch headroom
    want = max(block_bytes + (8 << 20), 32 << 20)
    return int(min(want, cap))


def _make_lsnn_kernel(tc, t_valid, needs_mask, unroll):
    """Build the per-(batch block, time chunk) kernel.

    The four state outputs use a constant index map along the time axis, so
    they stay resident in VMEM across time chunks and double as the carried
    recurrent state (no scratch buffers needed)."""

    def kernel(i_in_ref, w_rec_t_ref, z0_ref, v0_ref, i0_ref, b0_ref,
               spikes_ref, zf_ref, vf_ref, if_ref, bf_ref):
        f32 = jnp.float32

        # Initialize the carried state from the provided initial state at t == 0.
        @pl.when(pl.program_id(1) == 0)
        def _init():
            zf_ref[...] = z0_ref[...]
            vf_ref[...] = v0_ref[...]
            if_ref[...] = i0_ref[...]
            bf_ref[...] = b0_ref[...]

        w_rec_t = w_rec_t_ref[...]              # (H_pad, H_pad), bf16 by default

        z = zf_ref[...]
        v = vf_ref[...]
        i = if_ref[...]
        b = bf_ref[...]
        # Warm up the one-step software pipeline: recurrent current consumed by
        # the first timestep of this chunk (z = previous chunk's last spikes).
        i_rec = jnp.dot(z.astype(w_rec_t.dtype), w_rec_t,
                        preferred_element_type=f32)

        def step(s, carry):
            z, v, i, b, i_rec = carry
            # decays (f32 VPU math)
            v_dec = v + (DT * TAU_MEM_INV) * ((V_LEAK - v) + i)
            i_dec = i + (-DT * TAU_SYN_INV) * i
            b_dec = b + (DT * TAU_ADAPT_INV) * (V_TH - b)
            # spike decision: one compare, then cheap selects on the crit path
            spike = v_dec > b_dec
            z_new = spike.astype(f32)
            # Issue NEXT step's recurrent matmul immediately (consumed at s+1);
            # this keeps the MXU latency off the serial z->i->v->z chain even
            # when the loop is only partially unrolled.
            i_rec_next = jnp.dot(z_new.astype(w_rec_t.dtype), w_rec_t,
                                 preferred_element_type=f32)
            v_new = jnp.where(spike, V_RESET, v_dec)
            b_new = b_dec + jnp.where(spike, TAU_ADAPT_INV * BETA, 0.0)
            # this step's synaptic current uses the PREVIOUS step's spikes
            i_new = i_dec + i_in_ref[s].astype(f32) + i_rec
            # emit this timestep's spikes (narrow dtype, lane-dense block)
            spikes_ref[s] = z_new.astype(spikes_ref.dtype)
            if needs_mask:
                # Only the trailing padded timesteps of the last chunk are
                # invalid; freeze the carried state there so the final state
                # equals the state at t == T.
                t_glob = pl.program_id(1) * tc + s
                valid = t_glob < t_valid
                z_new = jnp.where(valid, z_new, z)
                v_new = jnp.where(valid, v_new, v)
                i_new = jnp.where(valid, i_new, i)
                b_new = jnp.where(valid, b_new, b)
            return z_new, v_new, i_new, b_new, i_rec_next

        z, v, i, b, _ = lax.fori_loop(0, tc, step, (z, v, i, b, i_rec),
                                      unroll=unroll)

        # carry state forward (these are the final-state outputs on the last chunk)
        zf_ref[...] = z
        vf_ref[...] = v
        if_ref[...] = i
        bf_ref[...] = b

    return kernel


def lsnn_layer_forward(x, w_in, w_rec, state=None, *,
                       weight_dtype=jnp.bfloat16,
                       spike_dtype=jnp.bfloat16,
                       i_in_dtype=jnp.float32,
                       input_precision=None,
                       time_chunk=None,
                       num_batch_blocks=None):
    """x: (T, B, I).  w_in: (H, I).  w_rec: (H, H).
    Returns (spikes (T, B, H) in `spike_dtype`, (z, v, i, b) each (B, H) f32).
    Set weight_dtype=jnp.float32 for f32 recurrent weights (closer to norse);
    i_in_dtype=jnp.bfloat16 halves the input-current HBM stream (v5e win) at
    the cost of possible marginal spike flips."""
    T, B, I = x.shape
    H = w_in.shape[0]
    f32 = jnp.float32

    H_pad = _round_up(max(H, 128), 128)      # lane-dense outputs / MXU friendly
    B_pad = _round_up(max(B, 16), 16)        # sublane friendly (also for bf16)

    # ---- time chunking: pad T to a multiple of the chunk, mask if needed ----
    if time_chunk is None:
        tc = _cdiv(T, _cdiv(T, 32))          # <= 32 steps/grid-step, minimal pad
    else:
        tc = max(1, min(int(time_chunk), T))
    nt = _cdiv(T, tc)
    T_pad = nt * tc
    needs_mask = (T_pad != T)

    # ---- batch blocking: shard independent recurrences across TensorCores ---
    n_tc = _tensorcores_per_chip()
    if num_batch_blocks is None:
        num_batch_blocks = n_tc if (n_tc > 1 and B_pad >= 16 * n_tc) else 1
    nb = max(1, int(num_batch_blocks))
    B_pad = _round_up(B_pad, 8 * nb)
    bb = B_pad // nb

    # ---- hoisted input projection: one big matmul outside the recurrence ----
    # (default MXU precision; HIGHEST was ~3-6x the cost for accuracy that is
    #  thrown away downstream of the bf16-quantized recurrence)
    proj_dtype = x.dtype if x.dtype == jnp.bfloat16 else f32
    w_in_t = jnp.pad(jnp.asarray(w_in).T.astype(proj_dtype),
                     ((0, 0), (0, H_pad - H)))                    # (I, H_pad)
    i_in = jnp.dot(x.reshape(T * B, I).astype(proj_dtype), w_in_t,
                   preferred_element_type=f32,
                   precision=input_precision).reshape(T, B, H_pad)
    i_in = jnp.pad(i_in.astype(i_in_dtype),
                   ((0, T_pad - T), (0, B_pad - B), (0, 0)))      # (T_pad, B_pad, H_pad)

    # recurrent weights: transposed, zero-padded, narrow MXU dtype
    w_rec_t = jnp.pad(jnp.asarray(w_rec).T.astype(f32),
                      ((0, H_pad - H), (0, H_pad - H))).astype(weight_dtype)

    if state is None:
        zeros = jnp.zeros((B_pad, H_pad), f32)
        z0 = v0 = i0 = b0 = zeros
    else:
        def _pad_state(a):
            return jnp.pad(jnp.asarray(a, f32), ((0, B_pad - B), (0, H_pad - H)))
        z0, v0, i0, b0 = (_pad_state(s) for s in state)

    state_spec = pl.BlockSpec((bb, H_pad), lambda b, t: (b, 0))
    seq_spec = pl.BlockSpec((tc, bb, H_pad), lambda b, t: (t, b, 0))
    # Loop-invariant weight block: single-buffer once it dominates VMEM.
    if H_pad >= 1024:
        try:
            wrec_spec = pl.BlockSpec((H_pad, H_pad), lambda b, t: (0, 0),
                                     pipeline_mode=pl.Buffered(1))
        except TypeError:  # older BlockSpec without pipeline_mode
            wrec_spec = pl.BlockSpec((H_pad, H_pad), lambda b, t: (0, 0))
    else:
        wrec_spec = pl.BlockSpec((H_pad, H_pad), lambda b, t: (0, 0))

    out_shape = (
        jax.ShapeDtypeStruct((T_pad, B_pad, H_pad), spike_dtype),  # spikes
        jax.ShapeDtypeStruct((B_pad, H_pad), f32),                 # z
        jax.ShapeDtypeStruct((B_pad, H_pad), f32),                 # v
        jax.ShapeDtypeStruct((B_pad, H_pad), f32),                 # i
        jax.ShapeDtypeStruct((B_pad, H_pad), f32),                 # b
    )

    # explicit scoped-VMEM budget (double-buffered streams + resident blocks)
    isz = lambda dt: jnp.dtype(dt).itemsize
    blk_bytes = (2 * tc * bb * H_pad * (isz(i_in_dtype) + isz(spike_dtype))
                 + 2 * H_pad * H_pad * isz(weight_dtype)
                 + 2 * 8 * bb * H_pad * 4)
    vmem_limit = _vmem_limit_bytes(blk_bytes)

    # vreg-pressure guard: full unroll only while a state block stays small
    state_vregs = _cdiv(bb * H_pad, 1024)
    unroll = True if state_vregs <= 4 else min(4, tc)

    kernel = _make_lsnn_kernel(tc, T, needs_mask, unroll)

    outs = pl.pallas_call(
        kernel,
        out_shape=out_shape,
        grid_spec=pltpu.PrefetchScalarGridSpec(
            num_scalar_prefetch=0,
            grid=(nb, nt),
            in_specs=[
                seq_spec,                                        # i_in chunk
                wrec_spec,                                       # W_rec^T
                state_spec, state_spec, state_spec, state_spec,  # z0, v0, i0, b0
            ],
            out_specs=[
                seq_spec,                                        # spikes chunk
                state_spec, state_spec, state_spec, state_spec,  # final state
            ],
        ),
        compiler_params=pltpu.CompilerParams(
            # batch blocks independent -> "parallel" (2nd TC on v7x/megacore);
            # recurrence over time chunks -> "arbitrary" (sequential).
            dimension_semantics=("parallel", "arbitrary"),
            vmem_limit_bytes=vmem_limit,
        ),
    )(i_in, w_rec_t, z0, v0, i0, b0)

    spikes, zf, vf, if_, bf = outs
    spikes = spikes[:T, :B, :H]
    unpad = lambda a: a[:B, :H]
    return spikes, (unpad(zf), unpad(vf), unpad(if_), unpad(bf))


def _reference(x, w_in, w_rec, weight_dtype=jnp.bfloat16, input_precision=None):
    """Pure-JAX reference mirroring norse lsnn_step (per-timestep recurrence).
    It uses the same W_rec quantization and the same hoisted/padded input
    projection (same matmul shape + precision) as the kernel wrapper, so the
    comparison isolates the Pallas recurrence rather than XLA matmul-precision
    choices."""
    T, B, I = x.shape
    H = w_in.shape[0]
    f32 = jnp.float32
    H_pad = _round_up(max(H, 128), 128)

    w_in_t = jnp.pad(jnp.asarray(w_in).T.astype(f32), ((0, 0), (0, H_pad - H)))
    i_in = jnp.dot(x.reshape(T * B, I).astype(f32), w_in_t,
                   preferred_element_type=f32,
                   precision=input_precision).reshape(T, B, H_pad)[..., :H]

    w_rec_q = jnp.asarray(w_rec).astype(weight_dtype)
    zeros = jnp.zeros((B, H), f32)

    def step(carry, i_in_t):
        z, v, i, b = carry
        v_dec = v + (DT * TAU_MEM_INV) * ((V_LEAK - v) + i)
        i_dec = i + (-DT * TAU_SYN_INV) * i
        b_dec = b + (DT * TAU_ADAPT_INV) * (V_TH - b)
        z_new = (v_dec - b_dec > 0.0).astype(f32)
        v_new = (1.0 - z_new) * v_dec + z_new * V_RESET
        i_new = (i_dec + i_in_t
                 + jnp.dot(z.astype(weight_dtype), w_rec_q.T,
                           preferred_element_type=f32))
        b_new = b_dec + z_new * (TAU_ADAPT_INV * BETA)
        return (z_new, v_new, i_new, b_new), z_new

    (zf, vf, if_, bf), spikes = lax.scan(step, (zeros, zeros, zeros, zeros), i_in)
    return spikes, (zf, vf, if_, bf)


if __name__ == "__main__":
    # LSNNLayer(LSNNCell, input_size=4, hidden_size=32); data (T=8, B=2, 4)
    T, B, I, H = 8, 2, 4, 32
    key = jax.random.PRNGKey(0)
    k_x, k_win, k_wrec = jax.random.split(key, 3)

    # deterministic "randn * sqrt(2/hidden_size)" init, as in norse LSNNCell
    scale = jnp.sqrt(2.0 / H)
    w_in = jax.random.normal(k_win, (H, I), jnp.float32) * scale
    w_rec = jax.random.normal(k_wrec, (H, H), jnp.float32) * scale
    # scale input up a bit so some neurons actually spike within 8 steps
    x = jax.random.normal(k_x, (T, B, I), jnp.float32) * 5.0

    fwd = jax.jit(lsnn_layer_forward)
    spikes, (zf, vf, if_, bf) = fwd(x, w_in, w_rec)
    jax.block_until_ready((spikes, zf, vf, if_, bf))

    # sanity check against pure-JAX reference (same quantization / precision)
    ref_spikes, (rz, rv, ri, rb) = _reference(x, w_in, w_rec)
    assert spikes.shape == (T, B, H)
    assert jnp.allclose(spikes.astype(jnp.float32), ref_spikes, atol=1e-5)
    assert jnp.allclose(zf, rz, atol=1e-5)
    assert jnp.allclose(vf, rv, atol=1e-3)
    assert jnp.allclose(if_, ri, atol=1e-3)
    assert jnp.allclose(bf, rb, atol=1e-4)

    print("KERNEL_OK")
</pallas_src>

<mosaic_0001>
module attributes {stable_mosaic.version = 11 : i64} {
  func.func @kernel(%arg0: i32, %arg1: i32, %arg2: memref<8x16x128xf32, #tpu.memory_space<vmem>>, %arg3: memref<128x128xbf16, #tpu.memory_space<vmem>>, %arg4: memref<16x128xf32, #tpu.memory_space<vmem>>, %arg5: memref<16x128xf32, #tpu.memory_space<vmem>>, %arg6: memref<16x128xf32, #tpu.memory_space<vmem>>, %arg7: memref<16x128xf32, #tpu.memory_space<vmem>>, %arg8: memref<8x16x128xbf16, #tpu.memory_space<vmem>>, %arg9: memref<16x128xf32, #tpu.memory_space<vmem>>, %arg10: memref<16x128xf32, #tpu.memory_space<vmem>>, %arg11: memref<16x128xf32, #tpu.memory_space<vmem>>, %arg12: memref<16x128xf32, #tpu.memory_space<vmem>>) attributes {dimension_semantics = [#tpu.dimension_semantics<parallel>, #tpu.dimension_semantics<arbitrary>], iteration_bounds = array<i64: 1, 1>, scalar_prefetch = 0 : i64, scratch_operands = 0 : i64, tpu.core_type = #tpu.core_type<tc>, window_params = [{transform_indices = @transform_0, window_bounds = array<i64: 8, 16, 128>}, {pipeline_mode = #tpu.pipeline_mode<synchronous>, transform_indices = @transform_1, window_bounds = array<i64: 128, 128>}, {transform_indices = @transform_2, window_bounds = array<i64: 16, 128>}, {transform_indices = @transform_3, window_bounds = array<i64: 16, 128>}, {transform_indices = @transform_4, window_bounds = array<i64: 16, 128>}, {transform_indices = @transform_5, window_bounds = array<i64: 16, 128>}, {transform_indices = @transform_6, window_bounds = array<i64: 8, 16, 128>}, {transform_indices = @transform_7, window_bounds = array<i64: 16, 128>}, {transform_indices = @transform_8, window_bounds = array<i64: 16, 128>}, {transform_indices = @transform_9, window_bounds = array<i64: 16, 128>}, {transform_indices = @transform_10, window_bounds = array<i64: 16, 128>}]} {
    %c0_i32 = arith.constant 0 : i32
    %0 = arith.cmpi eq, %arg1, %c0_i32 : i32
    %1 = arith.extui %0 : i1 to i32
    %c0_i32_0 = arith.constant 0 : i32
    %2 = arith.cmpi ne, %1, %c0_i32_0 : i32
    scf.if %2 {
      %c0_123 = arith.constant 0 : index
      %c0_124 = arith.constant 0 : index
      %294 = vector.load %arg4[%c0_123, %c0_124] : memref<16x128xf32, #tpu.memory_space<vmem>>, vector<16x128xf32>
      %c0_125 = arith.constant 0 : index
      %c0_126 = arith.constant 0 : index
      %295 = vector.load %arg9[%c0_125, %c0_126] : memref<16x128xf32, #tpu.memory_space<vmem>>, vector<16x128xf32>
      tpu.vector_store %arg9[%c0_125, %c0_126], %294 {strides = array<i32>} : memref<16x128xf32, #tpu.memory_space<vmem>>, vector<16x128xf32>,
      %c0_127 = arith.constant 0 : index
      %c0_128 = arith.constant 0 : index
      %296 = vector.load %arg5[%c0_127, %c0_128] : memref<16x128xf32, #tpu.memory_space<vmem>>, vector<16x128xf32>
      %c0_129 = arith.constant 0 : index
      %c0_130 = arith.constant 0 : index
      %297 = vector.load %arg10[%c0_129, %c0_130] : memref<16x128xf32, #tpu.memory_space<vmem>>, vector<16x128xf32>
      tpu.vector_store %arg10[%c0_129, %c0_130], %296 {strides = array<i32>} : memref<16x128xf32, #tpu.memory_space<vmem>>, vector<16x128xf32>,
      %c0_131 = arith.constant 0 : index
      %c0_132 = arith.constant 0 : index
      %298 = vector.load %arg6[%c0_131, %c0_132] : memref<16x128xf32, #tpu.memory_space<vmem>>, vector<16x128xf32>
      %c0_133 = arith.constant 0 : index
      %c0_134 = arith.constant 0 : index
      %299 = vector.load %arg11[%c0_133, %c0_134] : memref<16x128xf32, #tpu.memory_space<vmem>>, vector<16x128xf32>
      tpu.vector_store %arg11[%c0_133, %c0_134], %298 {strides = array<i32>} : memref<16x128xf32, #tpu.memory_space<vmem>>, vector<16x128xf32>,
      %c0_135 = arith.constant 0 : index
      %c0_136 = arith.constant 0 : index
      %300 = vector.load %arg7[%c0_135, %c0_136] : memref<16x128xf32, #tpu.memory_space<vmem>>, vector<16x128xf32>
      %c0_137 = arith.constant 0 : index
      %c0_138 = arith.constant 0 : index
      %301 = vector.load %arg12[%c0_137, %c0_138] : memref<16x128xf32, #tpu.memory_space<vmem>>, vector<16x128xf32>
      tpu.vector_store %arg12[%c0_137, %c0_138], %300 {strides = array<i32>} : memref<16x128xf32, #tpu.memory_space<vmem>>, vector<16x128xf32>,
    } else {
    }
    %c0 = arith.constant 0 : index
    %c0_1 = arith.constant 0 : index
    %3 = vector.load %arg3[%c0, %c0_1] : memref<128x128xbf16, #tpu.memory_space<vmem>>, vector<128x128xbf16>
    %c0_2 = arith.constant 0 : index
    %c0_3 = arith.constant 0 : index
    %4 = vector.load %arg9[%c0_2, %c0_3] : memref<16x128xf32, #tpu.memory_space<vmem>>, vector<16x128xf32>
    %c0_4 = arith.constant 0 : index
    %c0_5 = arith.constant 0 : index
    %5 = vector.load %arg10[%c0_4, %c0_5] : memref<16x128xf32, #tpu.memory_space<vmem>>, vector<16x128xf32>
    %c0_6 = arith.constant 0 : index
    %c0_7 = arith.constant 0 : index
    %6 = vector.load %arg11[%c0_6, %c0_7] : memref<16x128xf32, #tpu.memory_space<vmem>>, vector<16x128xf32>
    %c0_8 = arith.constant 0 : index
    %c0_9 = arith.constant 0 : index
    %7 = vector.load %arg12[%c0_8, %c0_9] : memref<16x128xf32, #tpu.memory_space<vmem>>, vector<16x128xf32>
    %8 = arith.truncf %4 : vector<16x128xf32> to vector<16x128xbf16>
    %cst = arith.constant dense<0.000000e+00> : vector<16x128xf32>
    %9 = tpu.matmul %8, %3, %cst {dimension_numbers = #tpu.dot_dimension_numbers<[1], [0], [0], [1], [0, 0, 1, 1], [], []>} : vector<16x128xbf16>, vector<128x128xbf16>, vector<16x128xf32> -> vector<16x128xf32>
    %c0_i32_10 = arith.constant 0 : i32
    %cst_11 = arith.constant 0.000000e+00 : f32
    %10 = vector.broadcast %cst_11 : f32 to vector<16x128xf32>
    %11 = arith.subf %10, %5 : vector<16x128xf32>
    %12 = arith.addf %11, %6 : vector<16x128xf32>
    %cst_12 = arith.constant 1.000000e-01 : f32
    %13 = vector.broadcast %cst_12 : f32 to vector<16x128xf32>
    %14 = arith.mulf %13, %12 : vector<16x128xf32>
    %15 = arith.addf %5, %14 : vector<16x128xf32>
    %cst_13 = arith.constant -2.000000e-01 : f32
    %16 = vector.broadcast %cst_13 : f32 to vector<16x128xf32>
    %17 = arith.mulf %16, %6 : vector<16x128xf32>
    %18 = arith.addf %6, %17 : vector<16x128xf32>
    %cst_14 = arith.constant 1.000000e+00 : f32
    %19 = vector.broadcast %cst_14 : f32 to vector<16x128xf32>
    %20 = arith.subf %19, %7 : vector<16x128xf32>
    %cst_15 = arith.constant 1.42857141E-6 : f32
    %21 = vector.broadcast %cst_15 : f32 to vector<16x128xf32>
    %22 = arith.mulf %21, %20 : vector<16x128xf32>
    %23 = arith.addf %7, %22 : vector<16x128xf32>
    %24 = arith.cmpf ogt, %15, %23 : vector<16x128xf32>
    %25 = arith.extui %24 : vector<16x128xi1> to vector<16x128xi32>
    %26 = arith.sitofp %25 : vector<16x128xi32> to vector<16x128xf32>
    %27 = arith.truncf %26 : vector<16x128xf32> to vector<16x128xbf16>
    %cst_16 = arith.constant dense<0.000000e+00> : vector<16x128xf32>
    %28 = tpu.matmul %27, %3, %cst_16 {dimension_numbers = #tpu.dot_dimension_numbers<[1], [0], [0], [1], [0, 0, 1, 1], [], []>} : vector<16x128xbf16>, vector<128x128xbf16>, vector<16x128xf32> -> vector<16x128xf32>
    %cst_17 = arith.constant 0.000000e+00 : f32
    %29 = vector.broadcast %cst_17 : f32 to vector<16x128xf32>
    %30 = arith.select %24, %29, %15 : vector<16x128xi1>, vector<16x128xf32>
    %cst_18 = arith.constant 0.00257142866 : f32
    %cst_19 = arith.constant 0.000000e+00 : f32
    %31 = vector.broadcast %cst_18 : f32 to vector<16x128xf32>
    %32 = vector.broadcast %cst_19 : f32 to vector<16x128xf32>
    %33 = arith.select %24, %31, %32 : vector<16x128xi1>, vector<16x128xf32>
    %34 = arith.addf %23, %33 : vector<16x128xf32>
    %35 = arith.index_cast %c0_i32_10 : i32 to index
    %c0_20 = arith.constant 0 : index
    %c0_21 = arith.constant 0 : index
    %36 = vector.load %arg2[%35, %c0_20, %c0_21] : memref<8x16x128xf32, #tpu.memory_space<vmem>>, vector<1x16x128xf32>
    %37 = vector.shape_cast %36 : vector<1x16x128xf32> to vector<16x128xf32>
    %38 = arith.addf %18, %37 : vector<16x128xf32>
    %39 = arith.addf %38, %9 : vector<16x128xf32>
    %40 = arith.truncf %26 : vector<16x128xf32> to vector<16x128xbf16>
    %41 = arith.index_cast %c0_i32_10 : i32 to index
    %c0_22 = arith.constant 0 : index
    %c0_23 = arith.constant 0 : index
    %42 = vector.load %arg8[%41, %c0_22, %c0_23] : memref<8x16x128xbf16, #tpu.memory_space<vmem>>, vector<1x16x128xbf16>
    %43 = vector.shape_cast %42 : vector<1x16x128xbf16> to vector<16x128xbf16>
    %44 = vector.shape_cast %40 : vector<16x128xbf16> to vector<1x16x128xbf16>
    tpu.vector_store %arg8[%41, %c0_22, %c0_23], %44 {strides = array<i32>} : memref<8x16x128xbf16, #tpu.memory_space<vmem>>, vector<1x16x128xbf16>,
    %c1_i32 = arith.constant 1 : i32
    %cst_24 = arith.constant 0.000000e+00 : f32
    %45 = vector.broadcast %cst_24 : f32 to vector<16x128xf32>
    %46 = arith.subf %45, %30 : vector<16x128xf32>
    %47 = arith.addf %46, %39 : vector<16x128xf32>
    %cst_25 = arith.constant 1.000000e-01 : f32
    %48 = vector.broadcast %cst_25 : f32 to vector<16x128xf32>
    %49 = arith.mulf %48, %47 : vector<16x128xf32>
    %50 = arith.addf %30, %49 : vector<16x128xf32>
    %cst_26 = arith.constant -2.000000e-01 : f32
    %51 = vector.broadcast %cst_26 : f32 to vector<16x128xf32>
    %52 = arith.mulf %51, %39 : vector<16x128xf32>
    %53 = arith.addf %39, %52 : vector<16x128xf32>
    %cst_27 = arith.constant 1.000000e+00 : f32
    %54 = vector.broadcast %cst_27 : f32 to vector<16x128xf32>
    %55 = arith.subf %54, %34 : vector<16x128xf32>
    %cst_28 = arith.constant 1.42857141E-6 : f32
    %56 = vector.broadcast %cst_28 : f32 to vector<16x128xf32>
    %57 = arith.mulf %56, %55 : vector<16x128xf32>
    %58 = arith.addf %34, %57 : vector<16x128xf32>
    %59 = arith.cmpf ogt, %50, %58 : vector<16x128xf32>
    %60 = arith.extui %59 : vector<16x128xi1> to vector<16x128xi32>
    %61 = arith.sitofp %60 : vector<16x128xi32> to vector<16x128xf32>
    %62 = arith.truncf %61 : vector<16x128xf32> to vector<16x128xbf16>
    %cst_29 = arith.constant dense<0.000000e+00> : vector<16x128xf32>
    %63 = tpu.matmul %62, %3, %cst_29 {dimension_numbers = #tpu.dot_dimension_numbers<[1], [0], [0], [1], [0, 0, 1, 1], [], []>} : vector<16x128xbf16>, vector<128x128xbf16>, vector<16x128xf32> -> vector<16x128xf32>
    %cst_30 = arith.constant 0.000000e+00 : f32
    %64 = vector.broadcast %cst_30 : f32 to vector<16x128xf32>
    %65 = arith.select %59, %64, %50 : vector<16x128xi1>, vector<16x128xf32>
    %cst_31 = arith.constant 0.00257142866 : f32
    %cst_32 = arith.constant 0.000000e+00 : f32
    %66 = vector.broadcast %cst_31 : f32 to vector<16x128xf32>
    %67 = vector.broadcast %cst_32 : f32 to vector<16x128xf32>
    %68 = arith.select %59, %66, %67 : vector<16x128xi1>, vector<16x128xf32>
    %69 = arith.addf %58, %68 : vector<16x128xf32>
    %70 = arith.index_cast %c1_i32 : i32 to index
    %c0_33 = arith.constant 0 : index
    %c0_34 = arith.constant 0 : index
    %71 = vector.load %arg2[%70, %c0_33, %c0_34] : memref<8x16x128xf32, #tpu.memory_space<vmem>>, vector<1x16x128xf32>
    %72 = vector.shape_cast %71 : vector<1x16x128xf32> to vector<16x128xf32>
    %73 = arith.addf %53, %72 : vector<16x128xf32>
    %74 = arith.addf %73, %28 : vector<16x128xf32>
    %75 = arith.truncf %61 : vector<16x128xf32> to vector<16x128xbf16>
    %76 = arith.index_cast %c1_i32 : i32 to index
    %c0_35 = arith.constant 0 : index
    %c0_36 = arith.constant 0 : index
    %77 = vector.load %arg8[%76, %c0_35, %c0_36] : memref<8x16x128xbf16, #tpu.memory_space<vmem>>, vector<1x16x128xbf16>
    %78 = vector.shape_cast %77 : vector<1x16x128xbf16> to vector<16x128xbf16>
    %79 = vector.shape_cast %75 : vector<16x128xbf16> to vector<1x16x128xbf16>
    tpu.vector_store %arg8[%76, %c0_35, %c0_36], %79 {strides = array<i32>} : memref<8x16x128xbf16, #tpu.memory_space<vmem>>, vector<1x16x128xbf16>,
    %c2_i32 = arith.constant 2 : i32
    %cst_37 = arith.constant 0.000000e+00 : f32
    %80 = vector.broadcast %cst_37 : f32 to vector<16x128xf32>
    %81 = arith.subf %80, %65 : vector<16x128xf32>
    %82 = arith.addf %81, %74 : vector<16x128xf32>
    %cst_38 = arith.constant 1.000000e-01 : f32
    %83 = vector.broadcast %cst_38 : f32 to vector<16x128xf32>
    %84 = arith.mulf %83, %82 : vector<16x128xf32>
    %85 = arith.addf %65, %84 : vector<16x128xf32>
    %cst_39 = arith.constant -2.000000e-01 : f32
    %86 = vector.broadcast %cst_39 : f32 to vector<16x128xf32>
    %87 = arith.mulf %86, %74 : vector<16x128xf32>
    %88 = arith.addf %74, %87 : vector<16x128xf32>
    %cst_40 = arith.constant 1.000000e+00 : f32
    %89 = vector.broadcast %cst_40 : f32 to vector<16x128xf32>
    %90 = arith.subf %89, %69 : vector<16x128xf32>
    %cst_41 = arith.constant 1.42857141E-6 : f32
    %91 = vector.broadcast %cst_41 : f32 to vector<16x128xf32>
    %92 = arith.mulf %91, %90 : vector<16x128xf32>
    %93 = arith.addf %69, %92 : vector<16x128xf32>
    %94 = arith.cmpf ogt, %85, %93 : vector<16x128xf32>
    %95 = arith.extui %94 : vector<16x128xi1> to vector<16x128xi32>
    %96 = arith.sitofp %95 : vector<16x128xi32> to vector<16x128xf32>
    %97 = arith.truncf %96 : vector<16x128xf32> to vector<16x128xbf16>
    %cst_42 = arith.constant dense<0.000000e+00> : vector<16x128xf32>
    %98 = tpu.matmul %97, %3, %cst_42 {dimension_numbers = #tpu.dot_dimension_numbers<[1], [0], [0], [1], [0, 0, 1, 1], [], []>} : vector<16x128xbf16>, vector<128x128xbf16>, vector<16x128xf32> -> vector<16x128xf32>
    %cst_43 = arith.constant 0.000000e+00 : f32
    %99 = vector.broadcast %cst_43 : f32 to vector<16x128xf32>
    %100 = arith.select %94, %99, %85 : vector<16x128xi1>, vector<16x128xf32>
    %cst_44 = arith.constant 0.00257142866 : f32
    %cst_45 = arith.constant 0.000000e+00 : f32
    %101 = vector.broadcast %cst_44 : f32 to vector<16x128xf32>
    %102 = vector.broadcast %cst_45 : f32 to vector<16x128xf32>
    %103 = arith.select %94, %101, %102 : vector<16x128xi1>, vector<16x128xf32>
    %104 = arith.addf %93, %103 : vector<16x128xf32>
    %105 = arith.index_cast %c2_i32 : i32 to index
    %c0_46 = arith.constant 0 : index
    %c0_47 = arith.constant 0 : index
    %106 = vector.load %arg2[%105, %c0_46, %c0_47] : memref<8x16x128xf32, #tpu.memory_space<vmem>>, vector<1x16x128xf32>
    %107 = vector.shape_cast %106 : vector<1x16x128xf32> to vector<16x128xf32>
    %108 = arith.addf %88, %107 : vector<16x128xf32>
    %109 = arith.addf %108, %63 : vector<16x128xf32>
    %110 = arith.truncf %96 : vector<16x128xf32> to vector<16x128xbf16>
    %111 = arith.index_cast %c2_i32 : i32 to index
    %c0_48 = arith.constant 0 : index
    %c0_49 = arith.constant 0 : index
    %112 = vector.load %arg8[%111, %c0_48, %c0_49] : memref<8x16x128xbf16, #tpu.memory_space<vmem>>, vector<1x16x128xbf16>
    %113 = vector.shape_cast %112 : vector<1x16x128xbf16> to vector<16x128xbf16>
    %114 = vector.shape_cast %110 : vector<16x128xbf16> to vector<1x16x128xbf16>
    tpu.vector_store %arg8[%111, %c0_48, %c0_49], %114 {strides = array<i32>} : memref<8x16x128xbf16, #tpu.memory_space<vmem>>, vector<1x16x128xbf16>,
    %c3_i32 = arith.constant 3 : i32
    %cst_50 = arith.constant 0.000000e+00 : f32
    %115 = vector.broadcast %cst_50 : f32 to vector<16x128xf32>
    %116 = arith.subf %115, %100 : vector<16x128xf32>
    %117 = arith.addf %116, %109 : vector<16x128xf32>
    %cst_51 = arith.constant 1.000000e-01 : f32
    %118 = vector.broadcast %cst_51 : f32 to vector<16x128xf32>
    %119 = arith.mulf %118, %117 : vector<16x128xf32>
    %120 = arith.addf %100, %119 : vector<16x128xf32>
    %cst_52 = arith.constant -2.000000e-01 : f32
    %121 = vector.broadcast %cst_52 : f32 to vector<16x128xf32>
    %122 = arith.mulf %121, %109 : vector<16x128xf32>
    %123 = arith.addf %109, %122 : vector<16x128xf32>
    %cst_53 = arith.constant 1.000000e+00 : f32
    %124 = vector.broadcast %cst_53 : f32 to vector<16x128xf32>
    %125 = arith.subf %124, %104 : vector<16x128xf32>
    %cst_54 = arith.constant 1.42857141E-6 : f32
    %126 = vector.broadcast %cst_54 : f32 to vector<16x128xf32>
    %127 = arith.mulf %126, %125 : vector<16x128xf32>
    %128 = arith.addf %104, %127 : vector<16x128xf32>
    %129 = arith.cmpf ogt, %120, %128 : vector<16x128xf32>
    %130 = arith.extui %129 : vector<16x128xi1> to vector<16x128xi32>
    %131 = arith.sitofp %130 : vector<16x128xi32> to vector<16x128xf32>
    %132 = arith.truncf %131 : vector<16x128xf32> to vector<16x128xbf16>
    %cst_55 = arith.constant dense<0.000000e+00> : vector<16x128xf32>
    %133 = tpu.matmul %132, %3, %cst_55 {dimension_numbers = #tpu.dot_dimension_numbers<[1], [0], [0], [1], [0, 0, 1, 1], [], []>} : vector<16x128xbf16>, vector<128x128xbf16>, vector<16x128xf32> -> vector<16x128xf32>
    %cst_56 = arith.constant 0.000000e+00 : f32
    %134 = vector.broadcast %cst_56 : f32 to vector<16x128xf32>
    %135 = arith.select %129, %134, %120 : vector<16x128xi1>, vector<16x128xf32>
    %cst_57 = arith.constant 0.00257142866 : f32
    %cst_58 = arith.constant 0.000000e+00 : f32
    %136 = vector.broadcast %cst_57 : f32 to vector<16x128xf32>
    %137 = vector.broadcast %cst_58 : f32 to vector<16x128xf32>
    %138 = arith.select %129, %136, %137 : vector<16x128xi1>, vector<16x128xf32>
    %139 = arith.addf %128, %138 : vector<16x128xf32>
    %140 = arith.index_cast %c3_i32 : i32 to index
    %c0_59 = arith.constant 0 : index
    %c0_60 = arith.constant 0 : index
    %141 = vector.load %arg2[%140, %c0_59, %c0_60] : memref<8x16x128xf32, #tpu.memory_space<vmem>>, vector<1x16x128xf32>
    %142 = vector.shape_cast %141 : vector<1x16x128xf32> to vector<16x128xf32>
    %143 = arith.addf %123, %142 : vector<16x128xf32>
    %144 = arith.addf %143, %98 : vector<16x128xf32>
    %145 = arith.truncf %131 : vector<16x128xf32> to vector<16x128xbf16>
    %146 = arith.index_cast %c3_i32 : i32 to index
    %c0_61 = arith.constant 0 : index
    %c0_62 = arith.constant 0 : index
    %147 = vector.load %arg8[%146, %c0_61, %c0_62] : memref<8x16x128xbf16, #tpu.memory_space<vmem>>, vector<1x16x128xbf16>
    %148 = vector.shape_cast %147 : vector<1x16x128xbf16> to vector<16x128xbf16>
    %149 = vector.shape_cast %145 : vector<16x128xbf16> to vector<1x16x128xbf16>
    tpu.vector_store %arg8[%146, %c0_61, %c0_62], %149 {strides = array<i32>} : memref<8x16x128xbf16, #tpu.memory_space<vmem>>, vector<1x16x128xbf16>,
    %c4_i32 = arith.constant 4 : i32
    %cst_63 = arith.constant 0.000000e+00 : f32
    %150 = vector.broadcast %cst_63 : f32 to vector<16x128xf32>
    %151 = arith.subf %150, %135 : vector<16x128xf32>
    %152 = arith.addf %151, %144 : vector<16x128xf32>
    %cst_64 = arith.constant 1.000000e-01 : f32
    %153 = vector.broadcast %cst_64 : f32 to vector<16x128xf32>
    %154 = arith.mulf %153, %152 : vector<16x128xf32>
    %155 = arith.addf %135, %154 : vector<16x128xf32>
    %cst_65 = arith.constant -2.000000e-01 : f32
    %156 = vector.broadcast %cst_65 : f32 to vector<16x128xf32>
    %157 = arith.mulf %156, %144 : vector<16x128xf32>
    %158 = arith.addf %144, %157 : vector<16x128xf32>
    %cst_66 = arith.constant 1.000000e+00 : f32
    %159 = vector.broadcast %cst_66 : f32 to vector<16x128xf32>
    %160 = arith.subf %159, %139 : vector<16x128xf32>
    %cst_67 = arith.constant 1.42857141E-6 : f32
    %161 = vector.broadcast %cst_67 : f32 to vector<16x128xf32>
    %162 = arith.mulf %161, %160 : vector<16x128xf32>
    %163 = arith.addf %139, %162 : vector<16x128xf32>
    %164 = arith.cmpf ogt, %155, %163 : vector<16x128xf32>
    %165 = arith.extui %164 : vector<16x128xi1> to vector<16x128xi32>
    %166 = arith.sitofp %165 : vector<16x128xi32> to vector<16x128xf32>
    %167 = arith.truncf %166 : vector<16x128xf32> to vector<16x128xbf16>
    %cst_68 = arith.constant dense<0.000000e+00> : vector<16x128xf32>
    %168 = tpu.matmul %167, %3, %cst_68 {dimension_numbers = #tpu.dot_dimension_numbers<[1], [0], [0], [1], [0, 0, 1, 1], [], []>} : vector<16x128xbf16>, vector<128x128xbf16>, vector<16x128xf32> -> vector<16x128xf32>
    %cst_69 = arith.constant 0.000000e+00 : f32
    %169 = vector.broadcast %cst_69 : f32 to vector<16x128xf32>
    %170 = arith.select %164, %169, %155 : vector<16x128xi1>, vector<16x128xf32>
    %cst_70 = arith.constant 0.00257142866 : f32
    %cst_71 = arith.constant 0.000000e+00 : f32
    %171 = vector.broadcast %cst_70 : f32 to vector<16x128xf32>
    %172 = vector.broadcast %cst_71 : f32 to vector<16x128xf32>
    %173 = arith.select %164, %171, %172 : vector<16x128xi1>, vector<16x128xf32>
    %174 = arith.addf %163, %173 : vector<16x128xf32>
    %175 = arith.index_cast %c4_i32 : i32 to index
    %c0_72 = arith.constant 0 : index
    %c0_73 = arith.constant 0 : index
    %176 = vector.load %arg2[%175, %c0_72, %c0_73] : memref<8x16x128xf32, #tpu.memory_space<vmem>>, vector<1x16x128xf32>
    %177 = vector.shape_cast %176 : vector<1x16x128xf32> to vector<16x128xf32>
    %178 = arith.addf %158, %177 : vector<16x128xf32>
    %179 = arith.addf %178, %133 : vector<16x128xf32>
    %180 = arith.truncf %166 : vector<16x128xf32> to vector<16x128xbf16>
    %181 = arith.index_cast %c4_i32 : i32 to index
    %c0_74 = arith.constant 0 : index
    %c0_75 = arith.constant 0 : index
    %182 = vector.load %arg8[%181, %c0_74, %c0_75] : memref<8x16x128xbf16, #tpu.memory_space<vmem>>, vector<1x16x128xbf16>
    %183 = vector.shape_cast %182 : vector<1x16x128xbf16> to vector<16x128xbf16>
    %184 = vector.shape_cast %180 : vector<16x128xbf16> to vector<1x16x128xbf16>
    tpu.vector_store %arg8[%181, %c0_74, %c0_75], %184 {strides = array<i32>} : memref<8x16x128xbf16, #tpu.memory_space<vmem>>, vector<1x16x128xbf16>,
    %c5_i32 = arith.constant 5 : i32
    %cst_76 = arith.constant 0.000000e+00 : f32
    %185 = vector.broadcast %cst_76 : f32 to vector<16x128xf32>
    %186 = arith.subf %185, %170 : vector<16x128xf32>
    %187 = arith.addf %186, %179 : vector<16x128xf32>
    %cst_77 = arith.constant 1.000000e-01 : f32
    %188 = vector.broadcast %cst_77 : f32 to vector<16x128xf32>
    %189 = arith.mulf %188, %187 : vector<16x128xf32>
    %190 = arith.addf %170, %189 : vector<16x128xf32>
    %cst_78 = arith.constant -2.000000e-01 : f32
    %191 = vector.broadcast %cst_78 : f32 to vector<16x128xf32>
    %192 = arith.mulf %191, %179 : vector<16x128xf32>
    %193 = arith.addf %179, %192 : vector<16x128xf32>
    %cst_79 = arith.constant 1.000000e+00 : f32
    %194 = vector.broadcast %cst_79 : f32 to vector<16x128xf32>
    %195 = arith.subf %194, %174 : vector<16x128xf32>
    %cst_80 = arith.constant 1.42857141E-6 : f32
    %196 = vector.broadcast %cst_80 : f32 to vector<16x128xf32>
    %197 = arith.mulf %196, %195 : vector<16x128xf32>
    %198 = arith.addf %174, %197 : vector<16x128xf32>
    %199 = arith.cmpf ogt, %190, %198 : vector<16x128xf32>
    %200 = arith.extui %199 : vector<16x128xi1> to vector<16x128xi32>
    %201 = arith.sitofp %200 : vector<16x128xi32> to vector<16x128xf32>
    %202 = arith.truncf %201 : vector<16x128xf32> to vector<16x128xbf16>
    %cst_81 = arith.constant dense<0.000000e+00> : vector<16x128xf32>
    %203 = tpu.matmul %202, %3, %cst_81 {dimension_numbers = #tpu.dot_dimension_numbers<[1], [0], [0], [1], [0, 0, 1, 1], [], []>} : vector<16x128xbf16>, vector<128x128xbf16>, vector<16x128xf32> -> vector<16x128xf32>
    %cst_82 = arith.constant 0.000000e+00 : f32
    %204 = vector.broadcast %cst_82 : f32 to vector<16x128xf32>
    %205 = arith.select %199, %204, %190 : vector<16x128xi1>, vector<16x128xf32>
    %cst_83 = arith.constant 0.00257142866 : f32
    %cst_84 = arith.constant 0.000000e+00 : f32
    %206 = vector.broadcast %cst_83 : f32 to vector<16x128xf32>
    %207 = vector.broadcast %cst_84 : f32 to vector<16x128xf32>
    %208 = arith.select %199, %206, %207 : vector<16x128xi1>, vector<16x128xf32>
    %209 = arith.addf %198, %208 : vector<16x128xf32>
    %210 = arith.index_cast %c5_i32 : i32 to index
    %c0_85 = arith.constant 0 : index
    %c0_86 = arith.constant 0 : index
    %211 = vector.load %arg2[%210, %c0_85, %c0_86] : memref<8x16x128xf32, #tpu.memory_space<vmem>>, vector<1x16x128xf32>
    %212 = vector.shape_cast %211 : vector<1x16x128xf32> to vector<16x128xf32>
    %213 = arith.addf %193, %212 : vector<16x128xf32>
    %214 = arith.addf %213, %168 : vector<16x128xf32>
    %215 = arith.truncf %201 : vector<16x128xf32> to vector<16x128xbf16>
    %216 = arith.index_cast %c5_i32 : i32 to index
    %c0_87 = arith.constant 0 : index
    %c0_88 = arith.constant 0 : index
    %217 = vector.load %arg8[%216, %c0_87, %c0_88] : memref<8x16x128xbf16, #tpu.memory_space<vmem>>, vector<1x16x128xbf16>
    %218 = vector.shape_cast %217 : vector<1x16x128xbf16> to vector<16x128xbf16>
    %219 = vector.shape_cast %215 : vector<16x128xbf16> to vector<1x16x128xbf16>
    tpu.vector_store %arg8[%216, %c0_87, %c0_88], %219 {strides = array<i32>} : memref<8x16x128xbf16, #tpu.memory_space<vmem>>, vector<1x16x128xbf16>,
    %c6_i32 = arith.constant 6 : i32
    %cst_89 = arith.constant 0.000000e+00 : f32
    %220 = vector.broadcast %cst_89 : f32 to vector<16x128xf32>
    %221 = arith.subf %220, %205 : vector<16x128xf32>
    %222 = arith.addf %221, %214 : vector<16x128xf32>
    %cst_90 = arith.constant 1.000000e-01 : f32
    %223 = vector.broadcast %cst_90 : f32 to vector<16x128xf32>
    %224 = arith.mulf %223, %222 : vector<16x128xf32>
    %225 = arith.addf %205, %224 : vector<16x128xf32>
    %cst_91 = arith.constant -2.000000e-01 : f32
    %226 = vector.broadcast %cst_91 : f32 to vector<16x128xf32>
    %227 = arith.mulf %226, %214 : vector<16x128xf32>
    %228 = arith.addf %214, %227 : vector<16x128xf32>
    %cst_92 = arith.constant 1.000000e+00 : f32
    %229 = vector.broadcast %cst_92 : f32 to vector<16x128xf32>
    %230 = arith.subf %229, %209 : vector<16x128xf32>
    %cst_93 = arith.constant 1.42857141E-6 : f32
    %231 = vector.broadcast %cst_93 : f32 to vector<16x128xf32>
    %232 = arith.mulf %231, %230 : vector<16x128xf32>
    %233 = arith.addf %209, %232 : vector<16x128xf32>
    %234 = arith.cmpf ogt, %225, %233 : vector<16x128xf32>
    %235 = arith.extui %234 : vector<16x128xi1> to vector<16x128xi32>
    %236 = arith.sitofp %235 : vector<16x128xi32> to vector<16x128xf32>
    %237 = arith.truncf %236 : vector<16x128xf32> to vector<16x128xbf16>
    %cst_94 = arith.constant dense<0.000000e+00> : vector<16x128xf32>
    %238 = tpu.matmul %237, %3, %cst_94 {dimension_numbers = #tpu.dot_dimension_numbers<[1], [0], [0], [1], [0, 0, 1, 1], [], []>} : vector<16x128xbf16>, vector<128x128xbf16>, vector<16x128xf32> -> vector<16x128xf32>
    %cst_95 = arith.constant 0.000000e+00 : f32
    %239 = vector.broadcast %cst_95 : f32 to vector<16x128xf32>
    %240 = arith.select %234, %239, %225 : vector<16x128xi1>, vector<16x128xf32>
    %cst_96 = arith.constant 0.00257142866 : f32
    %cst_97 = arith.constant 0.000000e+00 : f32
    %241 = vector.broadcast %cst_96 : f32 to vector<16x128xf32>
    %242 = vector.broadcast %cst_97 : f32 to vector<16x128xf32>
    %243 = arith.select %234, %241, %242 : vector<16x128xi1>, vector<16x128xf32>
    %244 = arith.addf %233, %243 : vector<16x128xf32>
    %245 = arith.index_cast %c6_i32 : i32 to index
    %c0_98 = arith.constant 0 : index
    %c0_99 = arith.constant 0 : index
    %246 = vector.load %arg2[%245, %c0_98, %c0_99] : memref<8x16x128xf32, #tpu.memory_space<vmem>>, vector<1x16x128xf32>
    %247 = vector.shape_cast %246 : vector<1x16x128xf32> to vector<16x128xf32>
    %248 = arith.addf %228, %247 : vector<16x128xf32>
    %249 = arith.addf %248, %203 : vector<16x128xf32>
    %250 = arith.truncf %236 : vector<16x128xf32> to vector<16x128xbf16>
    %251 = arith.index_cast %c6_i32 : i32 to index
    %c0_100 = arith.constant 0 : index
    %c0_101 = arith.constant 0 : index
    %252 = vector.load %arg8[%251, %c0_100, %c0_101] : memref<8x16x128xbf16, #tpu.memory_space<vmem>>, vector<1x16x128xbf16>
    %253 = vector.shape_cast %252 : vector<1x16x128xbf16> to vector<16x128xbf16>
    %254 = vector.shape_cast %250 : vector<16x128xbf16> to vector<1x16x128xbf16>
    tpu.vector_store %arg8[%251, %c0_100, %c0_101], %254 {strides = array<i32>} : memref<8x16x128xbf16, #tpu.memory_space<vmem>>, vector<1x16x128xbf16>,
    %c7_i32 = arith.constant 7 : i32
    %cst_102 = arith.constant 0.000000e+00 : f32
    %255 = vector.broadcast %cst_102 : f32 to vector<16x128xf32>
    %256 = arith.subf %255, %240 : vector<16x128xf32>
    %257 = arith.addf %256, %249 : vector<16x128xf32>
    %cst_103 = arith.constant 1.000000e-01 : f32
    %258 = vector.broadcast %cst_103 : f32 to vector<16x128xf32>
    %259 = arith.mulf %258, %257 : vector<16x128xf32>
    %260 = arith.addf %240, %259 : vector<16x128xf32>
    %cst_104 = arith.constant -2.000000e-01 : f32
    %261 = vector.broadcast %cst_104 : f32 to vector<16x128xf32>
    %262 = arith.mulf %261, %249 : vector<16x128xf32>
    %263 = arith.addf %249, %262 : vector<16x128xf32>
    %cst_105 = arith.constant 1.000000e+00 : f32
    %264 = vector.broadcast %cst_105 : f32 to vector<16x128xf32>
    %265 = arith.subf %264, %244 : vector<16x128xf32>
    %cst_106 = arith.constant 1.42857141E-6 : f32
    %266 = vector.broadcast %cst_106 : f32 to vector<16x128xf32>
    %267 = arith.mulf %266, %265 : vector<16x128xf32>
    %268 = arith.addf %244, %267 : vector<16x128xf32>
    %269 = arith.cmpf ogt, %260, %268 : vector<16x128xf32>
    %270 = arith.extui %269 : vector<16x128xi1> to vector<16x128xi32>
    %271 = arith.sitofp %270 : vector<16x128xi32> to vector<16x128xf32>
    %272 = arith.truncf %271 : vector<16x128xf32> to vector<16x128xbf16>
    %cst_107 = arith.constant dense<0.000000e+00> : vector<16x128xf32>
    %273 = tpu.matmul %272, %3, %cst_107 {dimension_numbers = #tpu.dot_dimension_numbers<[1], [0], [0], [1], [0, 0, 1, 1], [], []>} : vector<16x128xbf16>, vector<128x128xbf16>, vector<16x128xf32> -> vector<16x128xf32>
    %cst_108 = arith.constant 0.000000e+00 : f32
    %274 = vector.broadcast %cst_108 : f32 to vector<16x128xf32>
    %275 = arith.select %269, %274, %260 : vector<16x128xi1>, vector<16x128xf32>
    %cst_109 = arith.constant 0.00257142866 : f32
    %cst_110 = arith.constant 0.000000e+00 : f32
    %276 = vector.broadcast %cst_109 : f32 to vector<16x128xf32>
    %277 = vector.broadcast %cst_110 : f32 to vector<16x128xf32>
    %278 = arith.select %269, %276, %277 : vector<16x128xi1>, vector<16x128xf32>
    %279 = arith.addf %268, %278 : vector<16x128xf32>
    %280 = arith.index_cast %c7_i32 : i32 to index
    %c0_111 = arith.constant 0 : index
    %c0_112 = arith.constant 0 : index
    %281 = vector.load %arg2[%280, %c0_111, %c0_112] : memref<8x16x128xf32, #tpu.memory_space<vmem>>, vector<1x16x128xf32>
    %282 = vector.shape_cast %281 : vector<1x16x128xf32> to vector<16x128xf32>
    %283 = arith.addf %263, %282 : vector<16x128xf32>
    %284 = arith.addf %283, %238 : vector<16x128xf32>
    %285 = arith.truncf %271 : vector<16x128xf32> to vector<16x128xbf16>
    %286 = arith.index_cast %c7_i32 : i32 to index
    %c0_113 = arith.constant 0 : index
    %c0_114 = arith.constant 0 : index
    %287 = vector.load %arg8[%286, %c0_113, %c0_114] : memref<8x16x128xbf16, #tpu.memory_space<vmem>>, vector<1x16x128xbf16>
    %288 = vector.shape_cast %287 : vector<1x16x128xbf16> to vector<16x128xbf16>
    %289 = vector.shape_cast %285 : vector<16x128xbf16> to vector<1x16x128xbf16>
    tpu.vector_store %arg8[%286, %c0_113, %c0_114], %289 {strides = array<i32>} : memref<8x16x128xbf16, #tpu.memory_space<vmem>>, vector<1x16x128xbf16>,
    %c8_i32 = arith.constant 8 : i32
    %c0_115 = arith.constant 0 : index
    %c0_116 = arith.constant 0 : index
    %290 = vector.load %arg9[%c0_115, %c0_116] : memref<16x128xf32, #tpu.memory_space<vmem>>, vector<16x128xf32>
    tpu.vector_store %arg9[%c0_115, %c0_116], %271 {strides = array<i32>} : memref<16x128xf32, #tpu.memory_space<vmem>>, vector<16x128xf32>,
    %c0_117 = arith.constant 0 : index
    %c0_118 = arith.constant 0 : index
    %291 = vector.load %arg10[%c0_117, %c0_118] : memref<16x128xf32, #tpu.memory_space<vmem>>, vector<16x128xf32>
    tpu.vector_store %arg10[%c0_117, %c0_118], %275 {strides = array<i32>} : memref<16x128xf32, #tpu.memory_space<vmem>>, vector<16x128xf32>,
    %c0_119 = arith.constant 0 : index
    %c0_120 = arith.constant 0 : index
    %292 = vector.load %arg11[%c0_119, %c0_120] : memref<16x128xf32, #tpu.memory_space<vmem>>, vector<16x128xf32>
    tpu.vector_store %arg11[%c0_119, %c0_120], %284 {strides = array<i32>} : memref<16x128xf32, #tpu.memory_space<vmem>>, vector<16x128xf32>,
    %c0_121 = arith.constant 0 : index
    %c0_122 = arith.constant 0 : index
    %293 = vector.load %arg12[%c0_121, %c0_122] : memref<16x128xf32, #tpu.memory_space<vmem>>, vector<16x128xf32>
    tpu.vector_store %arg12[%c0_121, %c0_122], %279 {strides = array<i32>} : memref<16x128xf32, #tpu.memory_space<vmem>>, vector<16x128xf32>,
    return
  }
  func.func @transform_0(%arg0: i32, %arg1: i32) -> (i32, i32, i32) {
    %c0_i32 = arith.constant 0 : i32
    %c0_i32_0 = arith.constant 0 : i32
    return %arg1, %arg0, %c0_i32 : i32, i32, i32
  }
  func.func @transform_1(%arg0: i32, %arg1: i32) -> (i32, i32) {
    %c0_i32 = arith.constant 0 : i32
    %c0_i32_0 = arith.constant 0 : i32
    %c0_i32_1 = arith.constant 0 : i32
    return %c0_i32, %c0_i32_0 : i32, i32
  }
  func.func @transform_2(%arg0: i32, %arg1: i32) -> (i32, i32) {
    %c0_i32 = arith.constant 0 : i32
    %c0_i32_0 = arith.constant 0 : i32
    return %arg0, %c0_i32 : i32, i32
  }
  func.func @transform_3(%arg0: i32, %arg1: i32) -> (i32, i32) {
    %c0_i32 = arith.constant 0 : i32
    %c0_i32_0 = arith.constant 0 : i32
    return %arg0, %c0_i32 : i32, i32
  }
  func.func @transform_4(%arg0: i32, %arg1: i32) -> (i32, i32) {
    %c0_i32 = arith.constant 0 : i32
    %c0_i32_0 = arith.constant 0 : i32
    return %arg0, %c0_i32 : i32, i32
  }
  func.func @transform_5(%arg0: i32, %arg1: i32) -> (i32, i32) {
    %c0_i32 = arith.constant 0 : i32
    %c0_i32_0 = arith.constant 0 : i32
    return %arg0, %c0_i32 : i32, i32
  }
  func.func @transform_6(%arg0: i32, %arg1: i32) -> (i32, i32, i32) {
    %c0_i32 = arith.constant 0 : i32
    %c0_i32_0 = arith.constant 0 : i32
    return %arg1, %arg0, %c0_i32 : i32, i32, i32
  }
  func.func @transform_7(%arg0: i32, %arg1: i32) -> (i32, i32) {
    %c0_i32 = arith.constant 0 : i32
    %c0_i32_0 = arith.constant 0 : i32
    return %arg0, %c0_i32 : i32, i32
  }
  func.func @transform_8(%arg0: i32, %arg1: i32) -> (i32, i32) {
    %c0_i32 = arith.constant 0 : i32
    %c0_i32_0 = arith.constant 0 : i32
    return %arg0, %c0_i32 : i32, i32
  }
  func.func @transform_9(%arg0: i32, %arg1: i32) -> (i32, i32) {
    %c0_i32 = arith.constant 0 : i32
    %c0_i32_0 = arith.constant 0 : i32
    return %arg0, %c0_i32 : i32, i32
  }
  func.func @transform_10(%arg0: i32, %arg1: i32) -> (i32, i32) {
    %c0_i32 = arith.constant 0 : i32
    %c0_i32_0 = arith.constant 0 : i32
    return %arg0, %c0_i32 : i32, i32
  }
}

</mosaic_0001>

<bundles_post_ra>
// kernel: lsnn_layer_forward.1
= control target key start
LH: loop header
LB: loop body
LE: loop exit
PB: predicated region body
PF: predicated region fallthrough
CT: control target
= control target key end

     0   :  { %v1232_v0 = vmov 0.0   ;;  %vm1233_vm0 = vmmov 0   ;;  %v1234_v35 = vmov 1.0|1.0   ;;  %s1739_s1 = inlined_call_operand.vmem [shape: bf16[128,128], index: 1, kind: input, shape index: {}]   ;;  %s1740_s3 = inlined_call_operand.vmem [shape: f32[16,128], index: 3, kind: input, shape index: {}, may-alias: {2,3,4,5}]   ;;  %s1741_s4 = inlined_call_operand.vmem [shape: f32[16,128], index: 4, kind: input, shape index: {}, may-alias: {2,3,4,5}]   ;;  %s1742_s5 = inlined_call_operand.vmem [shape: f32[16,128], index: 5, kind: input, shape index: {}, may-alias: {2,3,4,5}]   ;;  %s1743_s6 = inlined_call_operand.vmem [shape: bf16[8,16,128], index: 6, kind: output, shape index: {0}]   ;;  %s1744_s2 = inlined_call_operand.vmem [shape: f32[16,128], index: 2, kind: input, shape index: {}, may-alias: {2,3,4,5}]   ;;  %s1745_s0 = inlined_call_operand.vmem [shape: f32[8,16,128], index: 0, kind: input, shape index: {}]   ;;  %s1746_s7 = inlined_call_operand.vmem [shape: f32[16,128], index: 7, kind: output, shape index: {1}]   ;;  %s1747_s8 = inlined_call_operand.vmem [shape: f32[16,128], index: 8, kind: output, shape index: {2}]   ;;  %s1748_s10 = inlined_call_operand.vmem [shape: f32[16,128], index: 10, kind: output, shape index: {4}]   ;;  %s1749_s9 = inlined_call_operand.vmem [shape: f32[16,128], index: 9, kind: output, shape index: {3}]  }
   0x1   :  { %1061 = vmatprep.subr.bf16.mxu0 %v1232_v0  ;;  %v1294_v1 = vld [vmem:[%s1739_s1] sm:$0xff]   ;;  %1081 = vmatprep.subr.bf16.mxu1 %v1232_v0  ;;  %v1305_v2 = vld [vmem:[%s1739_s1 + $0x8] sm:$0xff]   ;;  %v1314_v3 = vld [vmem:[%s1739_s1 + $0x10] sm:$0xff]  }
   0x2   :  { %1077 = vmatprep.mubr.msk.bf16.mxu0 %vm1233_vm0, %v1232_v0  ;;  %1097 = vmatprep.mubr.msk.bf16.mxu1 %vm1233_vm0, %v1232_v0  ;;  %v37_v4 = vld [vmem:[%s1740_s3] sm:$0xff]  ;;  %v38_v5 = vld [vmem:[%s1740_s3 + $0x8] sm:$0xff]  ;;  %v1339_v9 = vld [vmem:[%s1739_s1 + $0x18] sm:$0xff]  }
   0x3   :  { %1062 = vmatpush3.bf16.msra.mxu0 %v1294_v1  ;;  %1082 = vmatpush3.bf16.msra.mxu1 %v1294_v1  ;;  %v1328_v6 = vld [vmem:[%s1741_s4] sm:$0xff]  ;;  %v1333_v7 = vld [vmem:[%s1741_s4 + $0x8] sm:$0xff]  ;;  %v163_v8 = vsub.f32 0.0, %v37_v4  ;;  %v164_v12 = vsub.f32 0.0, %v38_v5  ;;  %v1394_v30 = vld [vmem:[%s1739_s1 + $0x30] sm:$0xff]  }
   0x4   :  { %1063 = vmatprep.subr.bf16.mxu0 %v1232_v0  ;;  %1083 = vmatprep.subr.bf16.mxu1 %v1232_v0  ;;  %v45_v10 = vld [vmem:[%s1742_s5] sm:$0xff]  ;;  %v46_v11 = vld [vmem:[%s1742_s5 + $0x8] sm:$0xff]  ;;  %v1406_v31 = vld [vmem:[%s1739_s1 + $0x38] sm:$0xff]   ;;  %v171_v37 = vmul.f32 -0.2, %v1328_v6 }
   0x5   :  { %v165_v13 = vadd.f32 %v163_v8, %v1328_v6  ;;  %v175_v14 = vsub.f32 1.0, %v45_v10  ;;  %v176_v15 = vsub.f32 1.0, %v46_v11  ;;  %v166_v16 = vadd.f32 %v164_v12, %v1333_v7  ;;  %v1356_v20 = vld [vmem:[%s1739_s1 + $0x20] sm:$0xff]   ;;  %v1375_v26 = vld [vmem:[%s1739_s1 + $0x28] sm:$0xff]  }
   0x6   :  { %v33_v32 = vld [vmem:[%s1744_s2] sm:$0xff]  ;;  %v34_v33 = vld [vmem:[%s1744_s2 + $0x8] sm:$0xff]  ;;  %v172_v39 = vmul.f32 -0.2, %v1333_v7  ;;  %v173_v41 = vadd.f32 %v171_v37, %v1328_v6 }
   0x7   :  { %1064 = vmatpush3.bf16.msra.mxu0 %v1305_v2  ;;  %1084 = vmatpush3.bf16.msra.mxu1 %v1305_v2  ;;  %v167_v17 = vmul.f32 0.1, %v165_v13  ;;  %v177_v18 = vmul.f32 1.4285714e-06, %v175_v14  ;;  %v178_v19 = vmul.f32 1.4285714e-06, %v176_v15  ;;  %v73_v34 = vpack.c.bf16 %v34_v33, %v33_v32 }
   0x8   :  { %1065 = vmatprep.subr.bf16.mxu0 %v1232_v0  ;;  %1085 = vmatprep.subr.bf16.mxu1 %v1232_v0  ;;  %v168_v21 = vmul.f32 0.1, %v166_v16  ;;  %v235_v43 = vld [vmem:[%s1745_s0] sm:$0xff]  ;;  %v174_v44 = vadd.f32 %v172_v39, %v1333_v7  ;;  %v236_v47 = vld [vmem:[%s1745_s0 + $0x8] sm:$0xff]  ;;  %v879_v16 = vld [vmem:[%s1745_s0 + $0x18] sm:$0xff] }
   0x9   :  { %v1361_v22 = vadd.f32 %v167_v17, %v37_v4  ;;  %v1363_v23 = vadd.f32 %v177_v18, %v45_v10  ;;  %v1365_v24 = vadd.f32 %v178_v19, %v46_v11  ;;  %v237_v48 = vadd.f32 %v235_v43, %v173_v41  ;;  %v878_v10 = vld [vmem:[%s1745_s0 + $0x10] sm:$0xff] }
   0xa   :  { %v1367_v25 = vadd.f32 %v168_v21, %v38_v5  ;;  %v238_v52 = vadd.f32 %v236_v47, %v174_v44 }
   0xb   :  { %1066 = vmatpush3.bf16.msra.mxu0 %v1314_v3  ;;  %1086 = vmatpush3.bf16.msra.mxu1 %v1314_v3  ;;  %vm181_vm1 = vcmp.gt.f32.partialorder %v1361_v22, %v1363_v23 }
   0xc   :  { %1067 = vmatprep.subr.bf16.mxu0 %v1232_v0  ;;  %1087 = vmatprep.subr.bf16.mxu1 %v1232_v0  ;;  %vm182_vm2 = vcmp.gt.f32.partialorder %v1367_v25, %v1365_v24  ;;  %v868_v27 = vsel %vm181_vm1, 1.0, %v1232_v0  ;;  %v231_v36 = vsel %vm181_vm1, 0.0025714287, %v1232_v0  ;;  %v229_v46 = vsel %vm181_vm1, 0.0, %v1361_v22 }
   0xd   :  { %v869_v28 = vsel %vm182_vm2, 1.0, %v1232_v0  ;;  %vm870_vm3 = vmpackc.low %vm182_vm2, %vm181_vm1  ;;  %v232_v38 = vsel %vm182_vm2, 0.0025714287, %v1232_v0  ;;  %v233_v40 = vadd.f32 %v231_v36, %v1363_v23  ;;  %v230_v50 = vsel %vm182_vm2, 0.0, %v1367_v25 }
   0xe   :  { %v959_v29 = vpack.c.bf16 %v869_v28, %v868_v27  ;;  %v234_v42 = vadd.f32 %v232_v38, %v1365_v24  ;;  %v250_v51 = vsub.f32 0.0, %v229_v46  ;;  %v251_v58 = vsub.f32 0.0, %v230_v50 }
   0xf   :  { %1068 = vmatpush3.bf16.msra.mxu0 %v1339_v9  ;;  %1088 = vmatpush3.bf16.msra.mxu1 %v1339_v9  ;;  %v262_v45 = vsub.f32 1.0, %v233_v40 }
  0x10   :  { %1069 = vmatprep.subr.bf16.mxu0 %v1232_v0  ;;  %1089 = vmatprep.subr.bf16.mxu1 %v1232_v0  ;;  %960 = vst [vmem:[%s1743_s6] sm:$0xff] %v959_v29   ;;  %v263_v49 = vsub.f32 1.0, %v234_v42 }
  0x11   :  { %v264_v54 = vmul.f32 1.4285714e-06, %v262_v45 }
  0x12   :  { %v265_v61 = vmul.f32 1.4285714e-06, %v263_v49 }
  0x13   :  { %1070 = vmatpush3.bf16.msra.mxu0 %v1356_v20  ;;  %1090 = vmatpush3.bf16.msra.mxu1 %v1356_v20  ;;  %v266_v8 = vadd.f32 %v264_v54, %v233_v40 }
  0x14   :  { %1071 = vmatprep.subr.bf16.mxu0 %v1232_v0  ;;  %1091 = vmatprep.subr.bf16.mxu1 %v1232_v0  ;;  %v267_v15 = vadd.f32 %v265_v61, %v234_v42 }
  0x17   :  { %1072 = vmatpush3.bf16.msra.mxu0 %v1375_v26  ;;  %1092 = vmatpush3.bf16.msra.mxu1 %v1375_v26 }
  0x18   :  { %1073 = vmatprep.subr.bf16.mxu0 %v1232_v0  ;;  %1093 = vmatprep.subr.bf16.mxu1 %v1232_v0 }
  0x1b   :  { %1074 = vmatpush3.bf16.msra.mxu0 %v1394_v30  ;;  %1094 = vmatpush3.bf16.msra.mxu1 %v1394_v30 }
  0x1c   :  { %1075 = vmatprep.subr.bf16.mxu0 %v1232_v0  ;;  %1095 = vmatprep.subr.bf16.mxu1 %v1232_v0 }
  0x1f   :  { %1076 = vmatpush3.bf16.msra.mxu0 %v1406_v31  ;;  %1096 = vmatpush3.bf16.msra.mxu1 %v1406_v31 }
  0x20   :  { %1101 = vmatprep.subr.bf16.mxu0 %v1232_v0  ;;  %1121 = vmatprep.subr.bf16.mxu1 %v1232_v0 }
  0x22   :  { %1078 = vmatmul.mubr.bf16.vlgmr.msra.gmra.mrb[0].mxu0 %v73_v34  ;;  %1098 = vmatmul.mubr.msk.bf16.vlgmr.msra.gmra.mrb[0].mxu1 %vm870_vm3, %v1234_v35 }
  0x23   :  { %1102 = vmatpush3.bf16.msra.mxu0 %v1294_v1  ;;  %1122 = vmatpush3.bf16.msra.mxu1 %v1294_v1 }
  0x24   :  { %1103 = vmatprep.subr.bf16.mxu0 %v1232_v0  ;;  %1123 = vmatprep.subr.bf16.mxu1 %v1232_v0 }
  0x25   :  { %1117 = vmatprep.mubr.msk.bf16.mxu0 %vm1233_vm0, %v1232_v0  ;;  %1137 = vmatprep.mubr.msk.bf16.mxu1 %vm1233_vm0, %v1232_v0 }
  0x27   :  { %1104 = vmatpush3.bf16.msra.mxu0 %v1305_v2  ;;  %1124 = vmatpush3.bf16.msra.mxu1 %v1305_v2 }
  0x28   :  { %1105 = vmatprep.subr.bf16.mxu0 %v1232_v0  ;;  %1125 = vmatprep.subr.bf16.mxu1 %v1232_v0 }
  0x2b   :  { %1106 = vmatpush3.bf16.msra.mxu0 %v1314_v3  ;;  %1126 = vmatpush3.bf16.msra.mxu1 %v1314_v3 }
  0x2c   :  { %1107 = vmatprep.subr.bf16.mxu0 %v1232_v0  ;;  %1127 = vmatprep.subr.bf16.mxu1 %v1232_v0 }
  0x2f   :  { %1108 = vmatpush3.bf16.msra.mxu0 %v1339_v9  ;;  %1128 = vmatpush3.bf16.msra.mxu1 %v1339_v9 }
  0x30   :  { %1109 = vmatprep.subr.bf16.mxu0 %v1232_v0  ;;  %1129 = vmatprep.subr.bf16.mxu1 %v1232_v0 }
  0x33   :  { %1110 = vmatpush3.bf16.msra.mxu0 %v1356_v20  ;;  %1130 = vmatpush3.bf16.msra.mxu1 %v1356_v20 }
  0x34   :  { %1111 = vmatprep.subr.bf16.mxu0 %v1232_v0  ;;  %1131 = vmatprep.subr.bf16.mxu1 %v1232_v0 }
  0x37   :  { %1112 = vmatpush3.bf16.msra.mxu0 %v1375_v26  ;;  %1132 = vmatpush3.bf16.msra.mxu1 %v1375_v26 }
  0x38   :  { %1113 = vmatprep.subr.bf16.mxu0 %v1232_v0  ;;  %1133 = vmatprep.subr.bf16.mxu1 %v1232_v0 }
  0x3b   :  { %1114 = vmatpush3.bf16.msra.mxu0 %v1394_v30  ;;  %1134 = vmatpush3.bf16.msra.mxu1 %v1394_v30 }
  0x3c   :  { %1115 = vmatprep.subr.bf16.mxu0 %v1232_v0  ;;  %1135 = vmatprep.subr.bf16.mxu1 %v1232_v0 }
  0x3f   :  { %1116 = vmatpush3.bf16.msra.mxu0 %v1406_v31  ;;  %1136 = vmatpush3.bf16.msra.mxu1 %v1406_v31 }
  0x40   :  { %1141 = vmatprep.subr.bf16.mxu0 %v1232_v0  ;;  %1161 = vmatprep.subr.bf16.mxu1 %v1232_v0 }
  0xf5   :  { %v156_v53 = vpop.f32.mrb[0].mxu0  ;;  %v222_v55 = vpop.f32.mrb[0].mxu1 }
  0xf6   :  { %v239_v56 = vadd.f32 %v237_v48, %v156_v53  ;;  %v1079_v57 = vpop.f32.mrb[1].mxu0  ;;  %v1099_v59 = vpop.f32.mrb[1].mxu1 }
  0xf7   :  { %v159_v60 = vpop.f32.mrb[2].mxu0  ;;  %v225_v62 = vpop.f32.mrb[2].mxu1 }
  0xf8   :  { %v252_v63 = vadd.f32 %v250_v51, %v239_v56  ;;  %v258_v4 = vmul.f32 -0.2, %v239_v56  ;;  %v240_v5 = vadd.f32 %v238_v52, %v159_v60  ;;  %v1080_v6 = vpop.f32.mrb[3].mxu0  ;;  %v1100_v7 = vpop.f32.mrb[3].mxu1 }
  0xf9   :  { %v889_v7 = vld [vmem:[%s1745_s0 + $0x28] sm:$0xff] }
  0xfa   :  { %v254_v11 = vmul.f32 0.1, %v252_v63  ;;  %v253_v12 = vadd.f32 %v251_v58, %v240_v5  ;;  %v259_v13 = vmul.f32 -0.2, %v240_v5  ;;  %v260_v14 = vadd.f32 %v258_v4, %v239_v56 }
  0xfc   :  { %v256_v17 = vadd.f32 %v254_v11, %v229_v46  ;;  %v255_v18 = vmul.f32 0.1, %v253_v12  ;;  %v325_v19 = vadd.f32 %v878_v10, %v260_v14  ;;  %v261_v21 = vadd.f32 %v259_v13, %v240_v5  ;;  %v888_v5 = vld [vmem:[%s1745_s0 + $0x20] sm:$0xff] }
  0xfe   :  { %vm268_vm4 = vcmp.gt.f32.partialorder %v256_v17, %v266_v8  ;;  %v257_v22 = vadd.f32 %v255_v18, %v230_v50  ;;  %v1498_v23 = vadd.f32 %v325_v19, %v222_v55  ;;  %v326_v24 = vadd.f32 %v879_v16, %v261_v21 }
  0xff   :  { %v318_v25 = vsel %vm268_vm4, 0.0025714287, %v1232_v0  ;;  %v316_v27 = vsel %vm268_vm4, 0.0, %v256_v17  ;;  %v874_v28 = vsel %vm268_vm4, 1.0, %v1232_v0 }
 0x100   :  { %vm269_vm5 = vcmp.gt.f32.partialorder %v257_v22, %v267_v15  ;;  %v320_v29 = vadd.f32 %v318_v25, %v266_v8  ;;  %v339_v32 = vsub.f32 0.0, %v316_v27  ;;  %v1504_v37 = vadd.f32 %v326_v24, %v225_v62 }
 0x101   :  { %v875_v33 = vsel %vm269_vm5, 1.0, %v1232_v0  ;;  %v319_v34 = vsel %vm269_vm5, 0.0025714287, %v1232_v0  ;;  %v317_v36 = vsel %vm269_vm5, 0.0, %v257_v22  ;;  %vm876_vm6 = vmpackc.low %vm269_vm5, %vm268_vm4  ;;  %v347_v62 = vmul.f32 -0.2, %v1498_v23 }
 0x102   :  { %v962_v38 = vpack.c.bf16 %v875_v33, %v874_v28  ;;  %v341_v39 = vadd.f32 %v339_v32, %v1498_v23  ;;  %v351_v40 = vsub.f32 1.0, %v320_v29  ;;  %v321_v41 = vadd.f32 %v319_v34, %v267_v15  ;;  %1118 = vmatmul.mubr.msk.bf16.vlgmr.msra.gmra.mrb[4].mxu0 %vm876_vm6, %v1234_v35 }
 0x103   :  { %v340_v42 = vsub.f32 0.0, %v317_v36  ;;  %1142 = vmatpush3.bf16.msra.mxu0 %v1294_v1  ;;  %1157 = vmatprep.mubr.msk.bf16.mxu0 %vm1233_vm0, %v1232_v0  ;;  %v348_v63 = vmul.f32 -0.2, %v1504_v37  ;;  %v349_v4 = vadd.f32 %v347_v62, %v1498_v23 }
 0x104   :  { %982 = vst [vmem:[%s1743_s6 + $0x8] sm:$0xff] %v962_v38   ;;  %v343_v43 = vmul.f32 0.1, %v341_v39  ;;  %v353_v44 = vmul.f32 1.4285714e-06, %v351_v40  ;;  %v352_v45 = vsub.f32 1.0, %v321_v41  ;;  %1143 = vmatprep.subr.bf16.mxu0 %v1232_v0 }
 0x105   :  { %v342_v46 = vadd.f32 %v340_v42, %v1504_v37  ;;  %v350_v6 = vadd.f32 %v348_v63, %v1504_v37  ;;  %v414_v8 = vadd.f32 %v888_v5, %v349_v4  ;;  %v898_v37 = vld [vmem:[%s1745_s0 + $0x30] sm:$0xff]  ;;  %v899_v39 = vld [vmem:[%s1745_s0 + $0x38] sm:$0xff] }
 0x106   :  { %v345_v47 = vadd.f32 %v343_v43, %v316_v27  ;;  %v355_v48 = vadd.f32 %v353_v44, %v320_v29  ;;  %v354_v49 = vmul.f32 1.4285714e-06, %v352_v45 }
 0x107   :  { %v344_v50 = vmul.f32 0.1, %v342_v46  ;;  %1144 = vmatpush3.bf16.msra.mxu0 %v1305_v2  ;;  %v415_v15 = vadd.f32 %v889_v7, %v350_v6 }
 0x108   :  { %vm357_vm7 = vcmp.gt.f32.partialorder %v345_v47, %v355_v48  ;;  %v356_v51 = vadd.f32 %v354_v49, %v321_v41  ;;  %1145 = vmatprep.subr.bf16.mxu0 %v1232_v0 }
 0x109   :  { %v407_v52 = vsel %vm357_vm7, 0.0025714287, %v1232_v0  ;;  %v346_v53 = vadd.f32 %v344_v50, %v317_v36  ;;  %v1519_v54 = vsel %vm357_vm7, 0.0, %v345_v47  ;;  %v884_v56 = vsel %vm357_vm7, 1.0, %v1232_v0 }
 0x10a   :  { %v1521_v55 = vadd.f32 %v407_v52, %v355_v48  ;;  %v428_v13 = vsub.f32 0.0, %v1519_v54 }
 0x10b   :  { %vm358_vm8 = vcmp.gt.f32.partialorder %v346_v53, %v356_v51  ;;  %1146 = vmatpush3.bf16.msra.mxu0 %v1314_v3 }
 0x10c   :  { %v885_v57 = vsel %vm358_vm8, 1.0, %v1232_v0  ;;  %v408_v58 = vsel %vm358_vm8, 0.0025714287, %v1232_v0  ;;  %vm886_vm9 = vmpackc.low %vm358_vm8, %vm357_vm7  ;;  %1147 = vmatprep.subr.bf16.mxu0 %v1232_v0  ;;  %v1528_v59 = vsel %vm358_vm8, 0.0, %v346_v53  ;;  %v440_v10 = vsub.f32 1.0, %v1521_v55 }
 0x10d   :  { %v965_v60 = vpack.c.bf16 %v885_v57, %v884_v56  ;;  %1138 = vmatmul.mubr.msk.bf16.vlgmr.msra.gmra.mrb[4].mxu1 %vm886_vm9, %v1234_v35  ;;  %v1531_v61 = vadd.f32 %v408_v58, %v356_v51  ;;  %v429_v18 = vsub.f32 0.0, %v1528_v59 }
 0x10e   :  { %1162 = vmatpush3.bf16.msra.mxu1 %v1294_v1  ;;  %1177 = vmatprep.mubr.msk.bf16.mxu1 %vm1233_vm0, %v1232_v0  ;;  %v442_v22 = vmul.f32 1.4285714e-06, %v440_v10 }
 0x10f   :  { %983 = vst [vmem:[%s1743_s6 + $0x10] sm:$0xff] %v965_v60   ;;  %1148 = vmatpush3.bf16.msra.mxu0 %v1339_v9  ;;  %1163 = vmatprep.subr.bf16.mxu1 %v1232_v0  ;;  %v441_v16 = vsub.f32 1.0, %v1531_v61 }
 0x110   :  { %1149 = vmatprep.subr.bf16.mxu0 %v1232_v0  ;;  %v444_v34 = vadd.f32 %v442_v22, %v1521_v55 }
 0x111   :  { %v443_v29 = vmul.f32 1.4285714e-06, %v441_v16 }
 0x112   :  { %1164 = vmatpush3.bf16.msra.mxu1 %v1305_v2 }
 0x113   :  { %1150 = vmatpush3.bf16.msra.mxu0 %v1356_v20  ;;  %1165 = vmatprep.subr.bf16.mxu1 %v1232_v0  ;;  %v445_v41 = vadd.f32 %v443_v29, %v1531_v61 }
 0x114   :  { %1151 = vmatprep.subr.bf16.mxu0 %v1232_v0 }
 0x116   :  { %1166 = vmatpush3.bf16.msra.mxu1 %v1314_v3 }
 0x117   :  { %1152 = vmatpush3.bf16.msra.mxu0 %v1375_v26  ;;  %1167 = vmatprep.subr.bf16.mxu1 %v1232_v0 }
 0x118   :  { %1153 = vmatprep.subr.bf16.mxu0 %v1232_v0 }
 0x11a   :  { %1168 = vmatpush3.bf16.msra.mxu1 %v1339_v9 }
 0x11b   :  { %1154 = vmatpush3.bf16.msra.mxu0 %v1394_v30  ;;  %1169 = vmatprep.subr.bf16.mxu1 %v1232_v0 }
 0x11c   :  { %1155 = vmatprep.subr.bf16.mxu0 %v1232_v0 }
 0x11e   :  { %1170 = vmatpush3.bf16.msra.mxu1 %v1356_v20 }
 0x11f   :  { %1156 = vmatpush3.bf16.msra.mxu0 %v1406_v31  ;;  %1171 = vmatprep.subr.bf16.mxu1 %v1232_v0 }
 0x120   :  { %1181 = vmatprep.subr.bf16.mxu0 %v1232_v0 }
 0x122   :  { %1172 = vmatpush3.bf16.msra.mxu1 %v1375_v26 }
 0x123   :  { %1173 = vmatprep.subr.bf16.mxu1 %v1232_v0 }
 0x126   :  { %1174 = vmatpush3.bf16.msra.mxu1 %v1394_v30 }
 0x127   :  { %1175 = vmatprep.subr.bf16.mxu1 %v1232_v0 }
 0x12a   :  { %1176 = vmatpush3.bf16.msra.mxu1 %v1406_v31 }
 0x12b   :  { %1201 = vmatprep.subr.bf16.mxu1 %v1232_v0 }
 0x1d5   :  { %v309_v11 = vpop.f32.mrb[4].mxu0 }
 0x1d6   :  { %v416_v12 = vadd.f32 %v414_v8, %v309_v11  ;;  %v1119_v14 = vpop.f32.mrb[5].mxu0 }
 0x1d7   :  { %v312_v17 = vpop.f32.mrb[6].mxu0 }
 0x1d8   :  { %v430_v19 = vadd.f32 %v428_v13, %v416_v12  ;;  %v436_v21 = vmul.f32 -0.2, %v416_v12  ;;  %v417_v23 = vadd.f32 %v415_v15, %v312_v17  ;;  %v1120_v24 = vpop.f32.mrb[7].mxu0 }
 0x1da   :  { %v432_v25 = vmul.f32 0.1, %v430_v19  ;;  %v431_v27 = vadd.f32 %v429_v18, %v417_v23  ;;  %v437_v28 = vmul.f32 -0.2, %v417_v23  ;;  %v438_v32 = vadd.f32 %v436_v21, %v416_v12 }
 0x1dc   :  { %v434_v33 = vadd.f32 %v432_v25, %v1519_v54  ;;  %v433_v36 = vmul.f32 0.1, %v431_v27  ;;  %v439_v38 = vadd.f32 %v437_v28, %v417_v23  ;;  %v503_v44 = vadd.f32 %v898_v37, %v438_v32 }
 0x1de   :  { %vm446_vm10 = vcmp.gt.f32.partialorder %v434_v33, %v444_v34  ;;  %v435_v40 = vadd.f32 %v433_v36, %v1528_v59  ;;  %v504_v45 = vadd.f32 %v899_v39, %v439_v38 }
 0x1df   :  { %v496_v42 = vsel %vm446_vm10, 0.0025714287, %v1232_v0  ;;  %v494_v43 = vsel %vm446_vm10, 0.0, %v434_v33  ;;  %v894_v46 = vsel %vm446_vm10, 1.0, %v1232_v0 }
 0x1e0   :  { %vm447_vm11 = vcmp.gt.f32.partialorder %v435_v40, %v445_v41  ;;  %v398_v47 = vpop.f32.mrb[4].mxu1  ;;  %v498_v48 = vadd.f32 %v496_v42, %v444_v34  ;;  %v517_v49 = vsub.f32 0.0, %v494_v43 }
 0x1e1   :  { %v895_v50 = vsel %vm447_vm11, 1.0, %v1232_v0  ;;  %v497_v51 = vsel %vm447_vm11, 0.0025714287, %v1232_v0  ;;  %v1595_v52 = vadd.f32 %v503_v44, %v398_v47  ;;  %v1139_v53 = vpop.f32.mrb[5].mxu1  ;;  %v495_v54 = vsel %vm447_vm11, 0.0, %v435_v40  ;;  %vm896_vm12 = vmpackc.low %vm447_vm11, %vm446_vm10 }
 0x1e2   :  { %v968_v55 = vpack.c.bf16 %v895_v50, %v894_v46  ;;  %v529_v56 = vsub.f32 1.0, %v498_v48  ;;  %v401_v57 = vpop.f32.mrb[6].mxu1  ;;  %v499_v58 = vadd.f32 %v497_v51, %v445_v41  ;;  %v518_v59 = vsub.f32 0.0, %v495_v54  ;;  %1158 = vmatmul.mubr.msk.bf16.vlgmr.msra.gmra.mrb[8].mxu0 %vm896_vm12, %v1234_v35  ;;  %v919_v51 = vld [vmem:[%s1745_s0 + $0x58] sm:$0xff] }
 0x1e3   :  { %v519_v60 = vadd.f32 %v517_v49, %v1595_v52  ;;  %v1600_v61 = vadd.f32 %v504_v45, %v401_v57  ;;  %v1140_v62 = vpop.f32.mrb[7].mxu1  ;;  %1182 = vmatpush3.bf16.msra.mxu0 %v1294_v1  ;;  %1197 = vmatprep.mubr.msk.bf16.mxu0 %vm1233_vm0, %v1232_v0  ;;  %v918_v49 = vld [vmem:[%s1745_s0 + $0x50] sm:$0xff] }
 0x1e4   :  { %984 = vst [vmem:[%s1743_s6 + $0x18] sm:$0xff] %v968_v55   ;;  %v531_v63 = vmul.f32 1.4285714e-06, %v529_v56  ;;  %v530_v4 = vsub.f32 1.0, %v499_v58  ;;  %1183 = vmatprep.subr.bf16.mxu0 %v1232_v0 }
 0x1e5   :  { %v521_v5 = vmul.f32 0.1, %v519_v60  ;;  %v520_v6 = vadd.f32 %v518_v59, %v1600_v61 }
 0x1e6   :  { %v533_v7 = vadd.f32 %v531_v63, %v498_v48  ;;  %v532_v8 = vmul.f32 1.4285714e-06, %v530_v4 }
 0x1e7   :  { %v523_v10 = vadd.f32 %v521_v5, %v494_v43  ;;  %v522_v11 = vmul.f32 0.1, %v520_v6  ;;  %1184 = vmatpush3.bf16.msra.mxu0 %v1305_v2 }
 0x1e8   :  { %v534_v12 = vadd.f32 %v532_v8, %v499_v58  ;;  %1185 = vmatprep.subr.bf16.mxu0 %v1232_v0 }
 0x1e9   :  { %vm535_vm13 = vcmp.gt.f32.partialorder %v523_v10, %v533_v7  ;;  %v524_v13 = vadd.f32 %v522_v11, %v495_v54 }
 0x1ea   :  { %v585_v14 = vsel %vm535_vm13, 0.0025714287, %v1232_v0  ;;  %v1613_v15 = vsel %vm535_vm13, 0.0, %v523_v10  ;;  %v904_v17 = vsel %vm535_vm13, 1.0, %v1232_v0 }
 0x1eb   :  { %vm536_vm14 = vcmp.gt.f32.partialorder %v524_v13, %v534_v12  ;;  %1186 = vmatpush3.bf16.msra.mxu0 %v1314_v3  ;;  %v1616_v16 = vadd.f32 %v585_v14, %v533_v7  ;;  %v606_v27 = vsub.f32 0.0, %v1613_v15 }
 0x1ec   :  { %v905_v18 = vsel %vm536_vm14, 1.0, %v1232_v0  ;;  %v586_v19 = vsel %vm536_vm14, 0.0025714287, %v1232_v0  ;;  %vm906_vm15 = vmpackc.low %vm536_vm14, %vm535_vm13  ;;  %1187 = vmatprep.subr.bf16.mxu0 %v1232_v0  ;;  %v1622_v21 = vsel %vm536_vm14, 0.0, %v524_v13 }
 0x1ed   :  { %v971_v22 = vpack.c.bf16 %v905_v18, %v904_v17  ;;  %1178 = vmatmul.mubr.msk.bf16.vlgmr.msra.gmra.mrb[8].mxu1 %vm906_vm15, %v1234_v35  ;;  %v588_v23 = vadd.f32 %v586_v19, %v534_v12  ;;  %v618_v24 = vsub.f32 1.0, %v1616_v16  ;;  %v607_v34 = vsub.f32 0.0, %v1622_v21 }
 0x1ee   :  { %1202 = vmatpush3.bf16.msra.mxu1 %v1294_v1  ;;  %1217 = vmatprep.mubr.msk.bf16.mxu1 %vm1233_vm0, %v1232_v0  ;;  %v525_v1 = vmul.f32 -0.2, %v1595_v52 }
 0x1ef   :  { %985 = vst [vmem:[%s1743_s6 + $0x20] sm:$0xff] %v971_v22   ;;  %1188 = vmatpush3.bf16.msra.mxu0 %v1339_v9  ;;  %1203 = vmatprep.subr.bf16.mxu1 %v1232_v0  ;;  %v619_v32 = vsub.f32 1.0, %v588_v23  ;;  %v620_v38 = vmul.f32 1.4285714e-06, %v618_v24 }
 0x1f0   :  { %1189 = vmatprep.subr.bf16.mxu0 %v1232_v0 }
 0x1f1   :  { %v621_v44 = vmul.f32 1.4285714e-06, %v619_v32  ;;  %v622_v47 = vadd.f32 %v620_v38, %v1616_v16 }
 0x1f2   :  { %1204 = vmatpush3.bf16.msra.mxu1 %v1305_v2  ;;  %v526_v2 = vmul.f32 -0.2, %v1600_v61 }
 0x1f3   :  { %1190 = vmatpush3.bf16.msra.mxu0 %v1356_v20  ;;  %1205 = vmatprep.subr.bf16.mxu1 %v1232_v0  ;;  %v623_v53 = vadd.f32 %v621_v44, %v588_v23 }
 0x1f4   :  { %1191 = vmatprep.subr.bf16.mxu0 %v1232_v0 }
 0x1f6   :  { %1206 = vmatpush3.bf16.msra.mxu1 %v1314_v3  ;;  %v527_v3 = vadd.f32 %v525_v1, %v1595_v52 }
 0x1f7   :  { %1192 = vmatpush3.bf16.msra.mxu0 %v1375_v26  ;;  %1207 = vmatprep.subr.bf16.mxu1 %v1232_v0 }
 0x1f8   :  { %1193 = vmatprep.subr.bf16.mxu0 %v1232_v0 }
 0x1fa   :  { %1208 = vmatpush3.bf16.msra.mxu1 %v1339_v9  ;;  %v908_v9 = vld [vmem:[%s1745_s0 + $0x40] sm:$0xff] }
 0x1fb   :  { %1194 = vmatpush3.bf16.msra.mxu0 %v1394_v30  ;;  %1209 = vmatprep.subr.bf16.mxu1 %v1232_v0 }
 0x1fc   :  { %1195 = vmatprep.subr.bf16.mxu0 %v1232_v0 }
 0x1fe   :  { %1210 = vmatpush3.bf16.msra.mxu1 %v1356_v20  ;;  %v528_v20 = vadd.f32 %v526_v2, %v1600_v61 }
 0x1ff   :  { %1196 = vmatpush3.bf16.msra.mxu0 %v1406_v31  ;;  %1211 = vmatprep.subr.bf16.mxu1 %v1232_v0 }
 0x202   :  { %1212 = vmatpush3.bf16.msra.mxu1 %v1375_v26  ;;  %v909_v26 = vld [vmem:[%s1745_s0 + $0x48] sm:$0xff] }
 0x203   :  { %1213 = vmatprep.subr.bf16.mxu1 %v1232_v0  ;;  %v593_v29 = vadd.f32 %v909_v26, %v528_v20 }
 0x206   :  { %1214 = vmatpush3.bf16.msra.mxu1 %v1394_v30  ;;  %v592_v30 = vadd.f32 %v908_v9, %v527_v3 }
 0x207   :  { %1215 = vmatprep.subr.bf16.mxu1 %v1232_v0 }
 0x20a   :  { %1216 = vmatpush3.bf16.msra.mxu1 %v1406_v31 }
 0x2b5   :  { %v487_v31 = vpop.f32.mrb[8].mxu0 }
 0x2b6   :  { %v594_v25 = vadd.f32 %v592_v30, %v487_v31  ;;  %v1159_v28 = vpop.f32.mrb[9].mxu0 }
 0x2b7   :  { %v490_v33 = vpop.f32.mrb[10].mxu0 }
 0x2b8   :  { %v608_v36 = vadd.f32 %v606_v27, %v594_v25  ;;  %v614_v37 = vmul.f32 -0.2, %v594_v25  ;;  %v595_v39 = vadd.f32 %v593_v29, %v490_v33  ;;  %v1160_v40 = vpop.f32.mrb[11].mxu0 }
 0x2ba   :  { %v610_v41 = vmul.f32 0.1, %v608_v36  ;;  %v609_v42 = vadd.f32 %v607_v34, %v595_v39  ;;  %v615_v43 = vmul.f32 -0.2, %v595_v39  ;;  %v616_v45 = vadd.f32 %v614_v37, %v594_v25  ;;  %v928_v34 = vld [vmem:[%s1745_s0 + $0x60] sm:$0xff]  ;;  %v929_v37 = vld [vmem:[%s1745_s0 + $0x68] sm:$0xff] }
 0x2bc   :  { %v612_v46 = vadd.f32 %v610_v41, %v1613_v15  ;;  %v611_v48 = vmul.f32 0.1, %v609_v42  ;;  %v617_v50 = vadd.f32 %v615_v43, %v595_v39  ;;  %v681_v56 = vadd.f32 %v918_v49, %v616_v45 }
 0x2be   :  { %vm624_vm0 = vcmp.gt.f32.partialorder %v612_v46, %v622_v47  ;;  %v613_v52 = vadd.f32 %v611_v48, %v1622_v21  ;;  %v682_v57 = vadd.f32 %v919_v51, %v617_v50 }
 0x2bf   :  { %v674_v54 = vsel %vm624_vm0, 0.0025714287, %v1232_v0  ;;  %v672_v55 = vsel %vm624_vm0, 0.0, %v612_v46  ;;  %v914_v58 = vsel %vm624_vm0, 1.0, %v1232_v0 }
 0x2c0   :  { %vm625_vm1 = vcmp.gt.f32.partialorder %v613_v52, %v623_v53  ;;  %v576_v59 = vpop.f32.mrb[8].mxu1  ;;  %v676_v60 = vadd.f32 %v674_v54, %v622_v47  ;;  %v695_v61 = vsub.f32 0.0, %v672_v55 }
 0x2c1   :  { %v915_v62 = vsel %vm625_vm1, 1.0, %v1232_v0  ;;  %v675_v63 = vsel %vm625_vm1, 0.0025714287, %v1232_v0  ;;  %v683_v4 = vadd.f32 %v681_v56, %v576_v59  ;;  %v1179_v5 = vpop.f32.mrb[9].mxu1  ;;  %v673_v6 = vsel %vm625_vm1, 0.0, %v613_v52  ;;  %vm916_vm2 = vmpackc.low %vm625_vm1, %vm624_vm0 }
 0x2c2   :  { %v974_v7 = vpack.c.bf16 %v915_v62, %v914_v58  ;;  %v707_v8 = vsub.f32 1.0, %v676_v60  ;;  %v579_v10 = vpop.f32.mrb[10].mxu1  ;;  %v677_v11 = vadd.f32 %v675_v63, %v623_v53  ;;  %v696_v12 = vsub.f32 0.0, %v673_v6  ;;  %1198 = vmatmul.mubr.msk.bf16.vlgmr.msra.gmra.mrb[12].mxu0 %vm916_vm2, %v1234_v35  ;;  %v937_v62 = vld [vmem:[%s1745_s0 + $0x78] sm:$0xff] }
 0x2c3   :  { %v697_v13 = vadd.f32 %v695_v61, %v683_v4  ;;  %v684_v14 = vadd.f32 %v682_v57, %v579_v10  ;;  %v1180_v15 = vpop.f32.mrb[11].mxu1  ;;  %v703_v29 = vmul.f32 -0.2, %v683_v4 }
 0x2c4   :  { %986 = vst [vmem:[%s1743_s6 + $0x28] sm:$0xff] %v974_v7   ;;  %v709_v16 = vmul.f32 1.4285714e-06, %v707_v8  ;;  %v708_v17 = vsub.f32 1.0, %v677_v11 }
 0x2c5   :  { %v699_v18 = vmul.f32 0.1, %v697_v13  ;;  %v698_v19 = vadd.f32 %v696_v12, %v684_v14  ;;  %v704_v32 = vmul.f32 -0.2, %v684_v14  ;;  %v705_v33 = vadd.f32 %v703_v29, %v683_v4 }
 0x2c6   :  { %v711_v21 = vadd.f32 %v709_v16, %v676_v60  ;;  %v710_v22 = vmul.f32 1.4285714e-06, %v708_v17  ;;  %v936_v60 = vld [vmem:[%s1745_s0 + $0x70] sm:$0xff] }
 0x2c7   :  { %v701_v23 = vadd.f32 %v699_v18, %v672_v55  ;;  %v700_v1 = vmul.f32 0.1, %v698_v19  ;;  %v706_v36 = vadd.f32 %v704_v32, %v684_v14  ;;  %v770_v38 = vadd.f32 %v928_v34, %v705_v33 }
 0x2c8   :  { %v712_v2 = vadd.f32 %v710_v22, %v677_v11 }
 0x2c9   :  { %vm713_vm3 = vcmp.gt.f32.partialorder %v701_v23, %v711_v21  ;;  %v702_v3 = vadd.f32 %v700_v1, %v673_v6  ;;  %v771_v43 = vadd.f32 %v929_v37, %v706_v36 }
 0x2ca   :  { %v763_v9 = vsel %vm713_vm3, 0.0025714287, %v1232_v0  ;;  %v761_v20 = vsel %vm713_vm3, 0.0, %v701_v23  ;;  %v924_v30 = vsel %vm713_vm3, 1.0, %v1232_v0 }
 0x2cb   :  { %vm714_vm4 = vcmp.gt.f32.partialorder %v702_v3, %v712_v2  ;;  %v765_v26 = vadd.f32 %v763_v9, %v711_v21  ;;  %v784_v41 = vsub.f32 0.0, %v761_v20 }
 0x2cc   :  { %v925_v24 = vsel %vm714_vm4, 1.0, %v1232_v0  ;;  %v764_v31 = vsel %vm714_vm4, 0.0025714287, %v1232_v0  ;;  %vm926_vm5 = vmpackc.low %vm714_vm4, %vm713_vm3  ;;  %v762_v25 = vsel %vm714_vm4, 0.0, %v702_v3 }
 0x2cd   :  { %v977_v27 = vpack.c.bf16 %v925_v24, %v924_v30  ;;  %1218 = vmatmul.mubr.msk.bf16.vlgmr.msra.gmra.mrb[12].mxu1 %vm926_vm5, %v1234_v35  ;;  %v766_v28 = vadd.f32 %v764_v31, %v712_v2  ;;  %v796_v39 = vsub.f32 1.0, %v765_v26  ;;  %v785_v46 = vsub.f32 0.0, %v762_v25 }
 0x2cf   :  { %987 = vst [vmem:[%s1743_s6 + $0x30] sm:$0xff] %v977_v27   ;;  %v797_v44 = vsub.f32 1.0, %v766_v28  ;;  %v798_v49 = vmul.f32 1.4285714e-06, %v796_v39 }
 0x2d1   :  { %v799_v55 = vmul.f32 1.4285714e-06, %v797_v44  ;;  %v800_v58 = vadd.f32 %v798_v49, %v765_v26 }
 0x2d3   :  { %v801_v4 = vadd.f32 %v799_v55, %v766_v28 }
 0x395   :  { %v665_v35 = vpop.f32.mrb[12].mxu0 }
 0x396   :  { %v772_v40 = vadd.f32 %v770_v38, %v665_v35  ;;  %v1199_v42 = vpop.f32.mrb[13].mxu0 }
 0x397   :  { %v668_v45 = vpop.f32.mrb[14].mxu0 }
 0x398   :  { %v786_v47 = vadd.f32 %v784_v41, %v772_v40  ;;  %v792_v48 = vmul.f32 -0.2, %v772_v40  ;;  %v773_v50 = vadd.f32 %v771_v43, %v668_v45  ;;  %v1200_v51 = vpop.f32.mrb[15].mxu0 }
 0x39a   :  { %v788_v52 = vmul.f32 0.1, %v786_v47  ;;  %v787_v53 = vadd.f32 %v785_v46, %v773_v50  ;;  %v793_v54 = vmul.f32 -0.2, %v773_v50  ;;  %v794_v56 = vadd.f32 %v792_v48, %v772_v40 }
 0x39c   :  { %v790_v57 = vadd.f32 %v788_v52, %v761_v20  ;;  %v789_v59 = vmul.f32 0.1, %v787_v53  ;;  %v795_v61 = vadd.f32 %v793_v54, %v773_v50  ;;  %v817_v8 = vadd.f32 %v936_v60, %v794_v56 }
 0x39e   :  { %vm802_vm6 = vcmp.gt.f32.partialorder %v790_v57, %v800_v58  ;;  %v791_v63 = vadd.f32 %v789_v59, %v762_v25  ;;  %v818_v12 = vadd.f32 %v937_v62, %v795_v61 }
 0x39f   :  { %v934_v5 = vsel %vm802_vm6, 1.0, %v1232_v0  ;;  %v808_v6 = vsel %vm802_vm6, 0.0, %v790_v57  ;;  %v810_v7 = vsel %vm802_vm6, 0.0025714287, %v1232_v0 }
 0x3a0   :  { %v812_v10 = vadd.f32 %v810_v7, %v800_v58  ;;  %832 = vst [vmem:[%s1746_s7] sm:$0xff] %v934_v5  ;;  %834 = vst [vmem:[%s1747_s8] sm:$0xff] %v808_v6  ;;  %vm803_vm7 = vcmp.gt.f32.partialorder %v791_v63, %v801_v4  ;;  %v754_v11 = vpop.f32.mrb[12].mxu1 }
 0x3a1   :  { %v935_v13 = vsel %vm803_vm7, 1.0, %v1232_v0  ;;  %v809_v14 = vsel %vm803_vm7, 0.0, %v791_v63  ;;  %v811_v15 = vsel %vm803_vm7, 0.0025714287, %v1232_v0  ;;  %v819_v16 = vadd.f32 %v817_v8, %v754_v11  ;;  %v1219_v17 = vpop.f32.mrb[13].mxu1 }
 0x3a2   :  { %838 = vst [vmem:[%s1748_s10] sm:$0xff] %v812_v10  ;;  %v813_v18 = vadd.f32 %v811_v15, %v801_v4  ;;  %v980_v19 = vpack.c.bf16 %v935_v13, %v934_v5  ;;  %833 = vst [vmem:[%s1746_s7 + $0x8] sm:$0xff] %v935_v13  ;;  %v757_v21 = vpop.f32.mrb[14].mxu1 }
 0x3a3   :  { %835 = vst [vmem:[%s1747_s8 + $0x8] sm:$0xff] %v809_v14  ;;  %836 = vst [vmem:[%s1749_s9] sm:$0xff] %v819_v16  ;;  %v820_v0 = vadd.f32 %v818_v12, %v757_v21  ;;  %v1220_v22 = vpop.f32.mrb[15].mxu1 }
 0x3a4   :  { %988 = vst [vmem:[%s1743_s6 + $0x38] sm:$0xff] %v980_v19   ;;  %839 = vst [vmem:[%s1748_s10 + $0x8] sm:$0xff] %v813_v18 }
 0x3a5   :  { %837 = vst [vmem:[%s1749_s9 + $0x8] sm:$0xff] %v820_v0 }

</bundles_post_ra>
